<compile_context>
chip_gen: v5e
topology: v5e:2x2
jax: 0.10.0
libtpu: 0.0.40
codegen_flags: <defaults>
</compile_context>

<pallas_src>
import functools

import jax
import jax.numpy as jnp
import numpy as np
from jax.experimental import pallas as pl
from jax.experimental.pallas import tpu as pltpu


# ----------------------------------------------------------------------------
# helpers
# ----------------------------------------------------------------------------
def _round_up(n, m):
    return ((n + m - 1) // m) * m


def _pick_tile(n, max_blocks):
    """Largest multiple of 128 that divides n, capped at max_blocks*128."""
    assert n % 128 == 0
    nb = n // 128
    for cand in range(min(nb, max_blocks), 0, -1):
        if nb % cand == 0:
            return cand * 128
    return 128


# ----------------------------------------------------------------------------
# Pallas kernel 1: lane-dense matmul + bias (+ReLU), tiled over the big M axis.
# out (N, M) = w (N, K) @ x (K, M) + b (N, 1).  Used for the conv (im2col).
# ----------------------------------------------------------------------------
def _matmul_bias_act_kernel(w_ref, x_ref, b_ref, o_ref, *, relu):
    acc = jnp.dot(w_ref[...], x_ref[...], preferred_element_type=jnp.float32)
    acc = acc + b_ref[...]
    if relu:
        acc = jnp.maximum(acc, 0.0)
    o_ref[...] = acc.astype(o_ref.dtype)


def pallas_matmul_bias(w, x, b, *, relu, max_tile_blocks=4):
    # w: (N, K) bf16, x: (K, M) bf16, b: (N, 1) f32  ->  (N, M) f32
    N, K = w.shape
    K2, M = x.shape
    assert K == K2
    Mp = max(128, _round_up(M, 128))          # lane-dense, unmasked stores
    if Mp != M:
        x = jnp.pad(x, ((0, 0), (0, Mp - M)))
    TM = _pick_tile(Mp, max_tile_blocks)
    out = pl.pallas_call(
        functools.partial(_matmul_bias_act_kernel, relu=relu),
        out_shape=jax.ShapeDtypeStruct((N, Mp), jnp.float32),
        grid=(Mp // TM,),
        in_specs=[
            pl.BlockSpec((N, K), lambda m: (0, 0)),     # weights resident
            pl.BlockSpec((K, TM), lambda m: (0, m)),    # pipelined input tiles
            pl.BlockSpec((N, 1), lambda m: (0, 0)),
        ],
        out_specs=pl.BlockSpec((N, TM), lambda m: (0, m)),
        compiler_params=pltpu.CompilerParams(
            dimension_semantics=("parallel",),
            vmem_limit_bytes=32 * 1024 * 1024),
    )(w, x, b)
    return out[:, :M]


# ----------------------------------------------------------------------------
# Conv3d + ReLU: im2col in JAX (slicing only) + lane-dense Pallas matmul.
# ----------------------------------------------------------------------------
def conv3d_relu(x, w, b, stride, padding):
    # x: (B, Cin, D, H, W)  w: (Cout, Cin, kd, kh, kw)  b: (Cout,)
    B, Cin, D, H, W = x.shape
    Cout, _, kd, kh, kw = w.shape
    sd, sh, sw = stride
    pd, ph, pw = padding
    xp = jnp.pad(x, ((0, 0), (0, 0), (pd, pd), (ph, ph), (pw, pw)))
    Do = (D + 2 * pd - kd) // sd + 1
    Ho = (H + 2 * ph - kh) // sh + 1
    Wo = (W + 2 * pw - kw) // sw + 1

    # TODO(synk): im2col still materialized by XLA; fusing the tap loop into
    # the Pallas matmul (shifted index_maps + f32 accumulator) would cut the
    # ~kd*kh*kw x HBM expansion for large volumes.
    patches = []
    for iz in range(kd):
        for iy in range(kh):
            for ix in range(kw):
                patches.append(
                    xp[:, :, iz:iz + Do * sd:sd, iy:iy + Ho * sh:sh,
                       ix:ix + Wo * sw:sw])
    pt = jnp.stack(patches, axis=0)                  # (taps, B, Cin, Do, Ho, Wo)
    pt = pt.transpose(2, 0, 1, 3, 4, 5)              # (Cin, taps, B, Do, Ho, Wo)
    K = Cin * kd * kh * kw
    M = B * Do * Ho * Wo
    lhs = pt.reshape(K, M).astype(jnp.bfloat16)      # rows ordered (cin, kz, ky, kx)
    wm = w.reshape(Cout, K).astype(jnp.bfloat16)
    bm = b.reshape(Cout, 1).astype(jnp.float32)

    out = pallas_matmul_bias(wm, lhs, bm, relu=True)   # (Cout, M), lane-dense
    out = out.reshape(Cout, B, Do, Ho, Wo).transpose(1, 0, 2, 3, 4)
    return out


# ----------------------------------------------------------------------------
# Pallas kernel 2: fused fc_loc = Linear(F->32) + ReLU + Linear(32->12).
# ----------------------------------------------------------------------------
def _fc_loc_kernel(x_ref, w1_ref, b1_ref, w2_ref, b2_ref, o_ref):
    h = jnp.dot(x_ref[...], w1_ref[...], preferred_element_type=jnp.float32)
    h = jnp.maximum(h + b1_ref[...], 0.0)
    theta = jnp.dot(h, w2_ref[...], preferred_element_type=jnp.float32)
    o_ref[...] = theta + b2_ref[...]


def pallas_fc_loc(flat, w1, b1, w2, b2):
    # flat (B, F), w1 (F, 32), b1 (1, 32), w2 (32, 12), b2 (1, 12) -> (B, 12)
    B, F = flat.shape
    return pl.pallas_call(
        _fc_loc_kernel,
        out_shape=jax.ShapeDtypeStruct((B, 12), jnp.float32),
        grid=(1,),
        in_specs=[
            pl.BlockSpec((B, F), lambda i: (0, 0)),
            pl.BlockSpec((F, 32), lambda i: (0, 0)),
            pl.BlockSpec((1, 32), lambda i: (0, 0)),
            pl.BlockSpec((32, 12), lambda i: (0, 0)),
            pl.BlockSpec((1, 12), lambda i: (0, 0)),
        ],
        out_specs=pl.BlockSpec((B, 12), lambda i: (0, 0)),
        compiler_params=pltpu.CompilerParams(
            dimension_semantics=("arbitrary",)),
    )(flat, w1, b1, w2, b2)


# ----------------------------------------------------------------------------
# Pallas kernel 3: affine_grid + trilinear weights/indices (VPU, theta scalars
# from SMEM, batch-invariant base coords hoisted to a resident input).
# Outputs: w8 (B, 8, P) f32 corner weights, idx8 (B, 8, P) int32 flat indices.
# ----------------------------------------------------------------------------
def _grid_weights_kernel(theta_ref, base_ref, w_ref, idx_ref, *, D, H, W):
    b = pl.program_id(0)
    fD, fH, fW = float(D), float(H), float(W)

    bx = base_ref[0:1, :]                      # (1, TP) normalized x coords
    by = base_ref[1:2, :]
    bz = base_ref[2:3, :]
    t = [theta_ref[b, j] for j in range(12)]   # SMEM scalar reads

    # theta @ [x, y, z, 1] as VPU FMAs (no badly-shaped MXU op)
    gx = t[0] * bx + t[1] * by + t[2] * bz + t[3]
    gy = t[4] * bx + t[5] * by + t[6] * bz + t[7]
    gz = t[8] * bx + t[9] * by + t[10] * bz + t[11]

    # grid_sample unnormalize, align_corners=False: ((g + 1) * S - 1) / 2
    fx = ((gx + 1.0) * fW - 1.0) * 0.5
    fy = ((gy + 1.0) * fH - 1.0) * 0.5
    fz = ((gz + 1.0) * fD - 1.0) * 0.5

    x0 = jnp.floor(fx)
    y0 = jnp.floor(fy)
    z0 = jnp.floor(fz)
    wx1 = fx - x0
    wx0 = 1.0 - wx1
    wy1 = fy - y0
    wy0 = 1.0 - wy1
    wz1 = fz - z0
    wz0 = 1.0 - wz1
    x0i = x0.astype(jnp.int32)
    y0i = y0.astype(jnp.int32)
    z0i = z0.astype(jnp.int32)

    w_rows = []
    i_rows = []
    for cz in (0, 1):
        for cy in (0, 1):
            for cx in (0, 1):
                xi = x0i + cx
                yi = y0i + cy
                zi = z0i + cz
                wgt = ((wx1 if cx else wx0) *
                       (wy1 if cy else wy0) *
                       (wz1 if cz else wz0))
                inb = ((xi >= 0) & (xi < W) & (yi >= 0) & (yi < H) &
                       (zi >= 0) & (zi < D))
                wgt = jnp.where(inb, wgt, 0.0)          # zeros padding mode
                xc = jnp.clip(xi, 0, W - 1)
                yc = jnp.clip(yi, 0, H - 1)
                zc = jnp.clip(zi, 0, D - 1)
                flat = zc * (H * W) + yc * W + xc       # (1, TP)
                w_rows.append(wgt)
                i_rows.append(flat)
    w_ref[0] = jnp.concatenate(w_rows, axis=0)          # (8, TP)
    idx_ref[0] = jnp.concatenate(i_rows, axis=0)        # (8, TP)


# ----------------------------------------------------------------------------
# Pallas kernel 4: 8 weighted corner adds (VPU) + residual add, lane-dense.
# ----------------------------------------------------------------------------
def _combine_kernel(g_ref, w_ref, xfix_ref, o_ref):
    acc = xfix_ref[0]                               # (C, TP) f32
    for k in range(8):
        acc = acc + g_ref[0, k] * w_ref[0, k:k + 1, :]
    o_ref[0] = acc.astype(o_ref.dtype)


def stn_sample_add(theta, x_moving, x_fixed):
    B, C, D, H, W = x_moving.shape
    P = D * H * W
    xm = x_moving.reshape(B, C, P).astype(jnp.float32)
    xf = x_fixed.reshape(B, C, P).astype(jnp.float32)

    # batch-invariant affine_grid base coords (align_corners=False): (2i+1)/S - 1
    zz, yy, xx = jnp.meshgrid(jnp.arange(D), jnp.arange(H), jnp.arange(W),
                              indexing="ij")
    nx = (2.0 * xx.reshape(-1).astype(jnp.float32) + 1.0) / W - 1.0
    ny = (2.0 * yy.reshape(-1).astype(jnp.float32) + 1.0) / H - 1.0
    nz = (2.0 * zz.reshape(-1).astype(jnp.float32) + 1.0) / D - 1.0
    base = jnp.stack([nx, ny, nz], axis=0)          # (3, P)

    theta_flat = theta.reshape(B, 12).astype(jnp.float32)

    TP = _pick_tile(P, 16) if P % 128 == 0 else P

    w8, idx8 = pl.pallas_call(
        functools.partial(_grid_weights_kernel, D=D, H=H, W=W),
        out_shape=(jax.ShapeDtypeStruct((B, 8, P), jnp.float32),
                   jax.ShapeDtypeStruct((B, 8, P), jnp.int32)),
        grid=(B, P // TP),
        in_specs=[
            pl.BlockSpec(memory_space=pltpu.MemorySpace.SMEM),  # theta scalars
            pl.BlockSpec((3, TP), lambda b, p: (0, p)),         # resident base
        ],
        out_specs=(pl.BlockSpec((1, 8, TP), lambda b, p: (b, 0, p)),
                   pl.BlockSpec((1, 8, TP), lambda b, p: (b, 0, p))),
        compiler_params=pltpu.CompilerParams(
            dimension_semantics=("parallel", "parallel")),
    )(theta_flat, base)

    # TODO(synk): the per-voxel data-dependent gather is done with XLA
    # take_along_axis (Pallas TPU has no clean per-element gather primitive);
    # it is O(8*C*P) instead of the old O(C*P^2) one-hot matmul.
    idx_b = jnp.broadcast_to(idx8[:, :, None, :], (B, 8, C, P))
    xm_b = jnp.broadcast_to(xm[:, None, :, :], (B, 8, C, P))
    gathered = jnp.take_along_axis(xm_b, idx_b, axis=3)  # (B, 8, C, P) f32

    out = pl.pallas_call(
        _combine_kernel,
        out_shape=jax.ShapeDtypeStruct((B, C, P), jnp.float32),
        grid=(B, P // TP),
        in_specs=[
            pl.BlockSpec((1, 8, C, TP), lambda b, p: (b, 0, 0, p)),
            pl.BlockSpec((1, 8, TP), lambda b, p: (b, 0, p)),
            pl.BlockSpec((1, C, TP), lambda b, p: (b, 0, p)),
        ],
        out_specs=pl.BlockSpec((1, C, TP), lambda b, p: (b, 0, p)),
        compiler_params=pltpu.CompilerParams(
            dimension_semantics=("parallel", "parallel"),
            vmem_limit_bytes=32 * 1024 * 1024),
    )(gathered, w8, xf)
    return out.reshape(B, C, D, H, W)


# ----------------------------------------------------------------------------
# Parameter construction (deterministic, mirrors STN_block.__init__).
# ----------------------------------------------------------------------------
def init_stn_params(key, input_feature_channels, kernel_sizes, strides,
                    spatial):
    ch = input_feature_channels * 2
    params = {"localization": []}
    d = h = w = spatial
    for ks, st in zip(kernel_sizes, strides):
        pad = np.ones(3, dtype=int)
        pad[np.array(ks) == 1] = 0
        key, k1, k2 = jax.random.split(key, 3)
        wgt = 0.05 * jax.random.normal(
            k1, (ch, ch, ks[0], ks[1], ks[2]), jnp.float32)
        b = 0.05 * jax.random.normal(k2, (ch,), jnp.float32)
        params["localization"].append((wgt, b, tuple(st), tuple(pad.tolist())))
        d = (d + 2 * pad[0] - ks[0]) // st[0] + 1
        h = (h + 2 * pad[1] - ks[1]) // st[1] + 1
        w = (w + 2 * pad[2] - ks[2]) // st[2] + 1
    flat_features = ch * d * h * w
    key, k1, k2 = jax.random.split(key, 3)
    params["fc1_w"] = 0.05 * jax.random.normal(
        k1, (32, flat_features), jnp.float32)              # LazyLinear(32)
    params["fc1_b"] = 0.05 * jax.random.normal(k2, (32,), jnp.float32)
    params["fc2_w"] = jnp.zeros((12, 32), jnp.float32)      # zeroed in __init__
    params["fc2_b"] = jnp.eye(4, dtype=jnp.float32)[:3].reshape(-1)  # identity
    return params


# ----------------------------------------------------------------------------
# Forward pass (STN_block.forward).
# ----------------------------------------------------------------------------
def stn_block_forward(params, x_fixed, x_moving):
    x = jnp.concatenate([x_fixed, x_moving], axis=1)      # (B, 2C, D, H, W)
    xs = x
    for (wgt, b, st, pad) in params["localization"]:
        xs = conv3d_relu(xs, wgt, b, st, pad)
    B = xs.shape[0]
    flat = xs.reshape(B, -1)
    theta = pallas_fc_loc(flat,
                          params["fc1_w"].T, params["fc1_b"].reshape(1, -1),
                          params["fc2_w"].T, params["fc2_b"].reshape(1, -1))
    theta = theta.reshape(B, 3, 4)
    return stn_sample_add(theta, x_moving, x_fixed)


if __name__ == "__main__":
    key = jax.random.PRNGKey(0)
    C = 2              # input_feature_channels (per image)
    B = 2
    S = 8              # spatial size (D = H = W)
    kernel_sizes = [(3, 3, 3), (3, 3, 3)]
    strides = [(2, 2, 2), (2, 2, 2)]

    kp, kf, km = jax.random.split(key, 3)
    params = init_stn_params(kp, C, kernel_sizes, strides, S)
    x_fixed = jax.random.normal(kf, (B, C, S, S, S), jnp.float32)
    x_moving = jax.random.normal(km, (B, C, S, S, S), jnp.float32)

    fwd = jax.jit(lambda xf, xm: stn_block_forward(params, xf, xm))
    out = jax.block_until_ready(fwd(x_fixed, x_moving))

    # With the freshly-initialized fc_loc (zero weight + identity bias), theta
    # is the identity affine, so grid_sample returns x_moving exactly and the
    # forward equals x_fixed + x_moving (sampler path kept in f32 so this is
    # exact; bf16 is only used for the conv MXU operands, which only influence
    # theta through the zeroed fc2 weight).
    ref = x_fixed + x_moving
    np.testing.assert_allclose(np.asarray(out), np.asarray(ref),
                               rtol=1e-4, atol=1e-4)
    print("KERNEL_OK")
</pallas_src>

<mosaic_0001>
module attributes {stable_mosaic.version = 11 : i64} {
  func.func @_matmul_bias_act_kernel(%arg0: i32, %arg1: memref<4x108xbf16, #tpu.memory_space<vmem>>, %arg2: memref<108x128xbf16, #tpu.memory_space<vmem>>, %arg3: memref<4x1xf32, #tpu.memory_space<vmem>>, %arg4: memref<4x128xf32, #tpu.memory_space<vmem>>) attributes {dimension_semantics = [#tpu.dimension_semantics<parallel>], iteration_bounds = array<i64: 1>, scalar_prefetch = 0 : i64, scratch_operands = 0 : i64, tpu.core_type = #tpu.core_type<tc>, window_params = [{pipeline_mode = #tpu.pipeline_mode<synchronous>, transform_indices = @transform_0, window_bounds = array<i64: 4, 108>}, {transform_indices = @transform_1, window_bounds = array<i64: 108, 128>}, {pipeline_mode = #tpu.pipeline_mode<synchronous>, transform_indices = @transform_2, window_bounds = array<i64: 4, 1>}, {transform_indices = @transform_3, window_bounds = array<i64: 4, 128>}]} {
    %c0 = arith.constant 0 : index
    %c0_0 = arith.constant 0 : index
    %0 = vector.load %arg1[%c0, %c0_0] : memref<4x108xbf16, #tpu.memory_space<vmem>>, vector<4x108xbf16>
    %c0_1 = arith.constant 0 : index
    %c0_2 = arith.constant 0 : index
    %1 = vector.load %arg2[%c0_1, %c0_2] : memref<108x128xbf16, #tpu.memory_space<vmem>>, vector<108x128xbf16>
    %cst = arith.constant dense<0.000000e+00> : vector<4x128xf32>
    %2 = tpu.matmul %0, %1, %cst {dimension_numbers = #tpu.dot_dimension_numbers<[1], [0], [0], [1], [0, 0, 1, 1], [], []>} : vector<4x108xbf16>, vector<108x128xbf16>, vector<4x128xf32> -> vector<4x128xf32>
    %c0_3 = arith.constant 0 : index
    %c0_4 = arith.constant 0 : index
    %3 = vector.load %arg3[%c0_3, %c0_4] : memref<4x1xf32, #tpu.memory_space<vmem>>, vector<4x1xf32>
    %4 = vector.broadcast %3 : vector<4x1xf32> to vector<4x128xf32>
    %5 = arith.addf %2, %4 : vector<4x128xf32>
    %cst_5 = arith.constant 0.000000e+00 : f32
    %6 = vector.broadcast %cst_5 : f32 to vector<4x128xf32>
    %7 = arith.maximumf %5, %6 : vector<4x128xf32>
    %c0_6 = arith.constant 0 : index
    %c0_7 = arith.constant 0 : index
    %8 = vector.load %arg4[%c0_6, %c0_7] : memref<4x128xf32, #tpu.memory_space<vmem>>, vector<4x128xf32>
    tpu.vector_store %arg4[%c0_6, %c0_7], %7 {strides = array<i32>} : memref<4x128xf32, #tpu.memory_space<vmem>>, vector<4x128xf32>,
    return
  }
  func.func @transform_0(%arg0: i32) -> (i32, i32) {
    %c0_i32 = arith.constant 0 : i32
    %c0_i32_0 = arith.constant 0 : i32
    %c0_i32_1 = arith.constant 0 : i32
    return %c0_i32, %c0_i32_0 : i32, i32
  }
  func.func @transform_1(%arg0: i32) -> (i32, i32) {
    %c0_i32 = arith.constant 0 : i32
    %c0_i32_0 = arith.constant 0 : i32
    return %c0_i32, %arg0 : i32, i32
  }
  func.func @transform_2(%arg0: i32) -> (i32, i32) {
    %c0_i32 = arith.constant 0 : i32
    %c0_i32_0 = arith.constant 0 : i32
    %c0_i32_1 = arith.constant 0 : i32
    return %c0_i32, %c0_i32_0 : i32, i32
  }
  func.func @transform_3(%arg0: i32) -> (i32, i32) {
    %c0_i32 = arith.constant 0 : i32
    %c0_i32_0 = arith.constant 0 : i32
    return %c0_i32, %arg0 : i32, i32
  }
}

module attributes {stable_mosaic.version = 11 : i64} {
  func.func @_fc_loc_kernel(%arg0: i32, %arg1: memref<2x32xf32, #tpu.memory_space<vmem>>, %arg2: memref<32x32xf32, #tpu.memory_space<vmem>>, %arg3: memref<1x32xf32, #tpu.memory_space<vmem>>, %arg4: memref<32x12xf32, #tpu.memory_space<vmem>>, %arg5: memref<1x12xf32, #tpu.memory_space<vmem>>, %arg6: memref<2x12xf32, #tpu.memory_space<vmem>>) attributes {dimension_semantics = [#tpu.dimension_semantics<arbitrary>], iteration_bounds = array<i64: 1>, scalar_prefetch = 0 : i64, scratch_operands = 0 : i64, tpu.core_type = #tpu.core_type<tc>, window_params = [{pipeline_mode = #tpu.pipeline_mode<synchronous>, transform_indices = @transform_0, window_bounds = array<i64: 2, 32>}, {pipeline_mode = #tpu.pipeline_mode<synchronous>, transform_indices = @transform_1, window_bounds = array<i64: 32, 32>}, {pipeline_mode = #tpu.pipeline_mode<synchronous>, transform_indices = @transform_2, window_bounds = array<i64: 1, 32>}, {pipeline_mode = #tpu.pipeline_mode<synchronous>, transform_indices = @transform_3, window_bounds = array<i64: 32, 12>}, {pipeline_mode = #tpu.pipeline_mode<synchronous>, transform_indices = @transform_4, window_bounds = array<i64: 1, 12>}, {pipeline_mode = #tpu.pipeline_mode<synchronous>, transform_indices = @transform_5, window_bounds = array<i64: 2, 12>}]} {
    %c0 = arith.constant 0 : index
    %c0_0 = arith.constant 0 : index
    %0 = vector.load %arg1[%c0, %c0_0] : memref<2x32xf32, #tpu.memory_space<vmem>>, vector<2x32xf32>
    %c0_1 = arith.constant 0 : index
    %c0_2 = arith.constant 0 : index
    %1 = vector.load %arg2[%c0_1, %c0_2] : memref<32x32xf32, #tpu.memory_space<vmem>>, vector<32x32xf32>
    %cst = arith.constant dense<0.000000e+00> : vector<2x32xf32>
    %2 = tpu.matmul %0, %1, %cst {dimension_numbers = #tpu.dot_dimension_numbers<[1], [0], [0], [1], [0, 0, 1, 1], [], []>} : vector<2x32xf32>, vector<32x32xf32>, vector<2x32xf32> -> vector<2x32xf32>
    %c0_3 = arith.constant 0 : index
    %c0_4 = arith.constant 0 : index
    %3 = vector.load %arg3[%c0_3, %c0_4] : memref<1x32xf32, #tpu.memory_space<vmem>>, vector<1x32xf32>
    %4 = vector.broadcast %3 : vector<1x32xf32> to vector<2x32xf32>
    %5 = arith.addf %2, %4 : vector<2x32xf32>
    %cst_5 = arith.constant 0.000000e+00 : f32
    %6 = vector.broadcast %cst_5 : f32 to vector<2x32xf32>
    %7 = arith.maximumf %5, %6 : vector<2x32xf32>
    %c0_6 = arith.constant 0 : index
    %c0_7 = arith.constant 0 : index
    %8 = vector.load %arg4[%c0_6, %c0_7] : memref<32x12xf32, #tpu.memory_space<vmem>>, vector<32x12xf32>
    %cst_8 = arith.constant dense<0.000000e+00> : vector<2x12xf32>
    %9 = tpu.matmul %7, %8, %cst_8 {dimension_numbers = #tpu.dot_dimension_numbers<[1], [0], [0], [1], [0, 0, 1, 1], [], []>} : vector<2x32xf32>, vector<32x12xf32>, vector<2x12xf32> -> vector<2x12xf32>
    %c0_9 = arith.constant 0 : index
    %c0_10 = arith.constant 0 : index
    %10 = vector.load %arg5[%c0_9, %c0_10] : memref<1x12xf32, #tpu.memory_space<vmem>>, vector<1x12xf32>
    %11 = vector.broadcast %10 : vector<1x12xf32> to vector<2x12xf32>
    %12 = arith.addf %9, %11 : vector<2x12xf32>
    %c0_11 = arith.constant 0 : index
    %c0_12 = arith.constant 0 : index
    %13 = vector.load %arg6[%c0_11, %c0_12] : memref<2x12xf32, #tpu.memory_space<vmem>>, vector<2x12xf32>
    tpu.vector_store %arg6[%c0_11, %c0_12], %12 {strides = array<i32>} : memref<2x12xf32, #tpu.memory_space<vmem>>, vector<2x12xf32>,
    return
  }
  func.func @transform_0(%arg0: i32) -> (i32, i32) {
    %c0_i32 = arith.constant 0 : i32
    %c0_i32_0 = arith.constant 0 : i32
    %c0_i32_1 = arith.constant 0 : i32
    return %c0_i32, %c0_i32_0 : i32, i32
  }
  func.func @transform_1(%arg0: i32) -> (i32, i32) {
    %c0_i32 = arith.constant 0 : i32
    %c0_i32_0 = arith.constant 0 : i32
    %c0_i32_1 = arith.constant 0 : i32
    return %c0_i32, %c0_i32_0 : i32, i32
  }
  func.func @transform_2(%arg0: i32) -> (i32, i32) {
    %c0_i32 = arith.constant 0 : i32
    %c0_i32_0 = arith.constant 0 : i32
    %c0_i32_1 = arith.constant 0 : i32
    return %c0_i32, %c0_i32_0 : i32, i32
  }
  func.func @transform_3(%arg0: i32) -> (i32, i32) {
    %c0_i32 = arith.constant 0 : i32
    %c0_i32_0 = arith.constant 0 : i32
    %c0_i32_1 = arith.constant 0 : i32
    return %c0_i32, %c0_i32_0 : i32, i32
  }
  func.func @transform_4(%arg0: i32) -> (i32, i32) {
    %c0_i32 = arith.constant 0 : i32
    %c0_i32_0 = arith.constant 0 : i32
    %c0_i32_1 = arith.constant 0 : i32
    return %c0_i32, %c0_i32_0 : i32, i32
  }
  func.func @transform_5(%arg0: i32) -> (i32, i32) {
    %c0_i32 = arith.constant 0 : i32
    %c0_i32_0 = arith.constant 0 : i32
    %c0_i32_1 = arith.constant 0 : i32
    return %c0_i32, %c0_i32_0 : i32, i32
  }
}

module attributes {stable_mosaic.version = 11 : i64} {
  func.func @_grid_weights_kernel(%arg0: i32, %arg1: i32, %arg2: memref<2x12xf32, #tpu.memory_space<smem>>, %arg3: memref<3x512xf32, #tpu.memory_space<vmem>>, %arg4: memref<1x8x512xf32, #tpu.memory_space<vmem>>, %arg5: memref<1x8x512xi32, #tpu.memory_space<vmem>>) attributes {dimension_semantics = [#tpu.dimension_semantics<parallel>, #tpu.dimension_semantics<parallel>], iteration_bounds = array<i64: 2, 1>, scalar_prefetch = 0 : i64, scratch_operands = 0 : i64, tpu.core_type = #tpu.core_type<tc>, window_params = [{transform_indices = @transform_0, window_bounds = array<i64: 2, 12>}, {transform_indices = @transform_1, window_bounds = array<i64: 3, 512>}, {transform_indices = @transform_2, window_bounds = array<i64: 1, 8, 512>}, {transform_indices = @transform_3, window_bounds = array<i64: 1, 8, 512>}]} {
    %c0 = arith.constant 0 : index
    %c0_0 = arith.constant 0 : index
    %0 = vector.load %arg3[%c0, %c0_0] : memref<3x512xf32, #tpu.memory_space<vmem>>, vector<1x512xf32>
    %c1 = arith.constant 1 : index
    %c0_1 = arith.constant 0 : index
    %1 = vector.load %arg3[%c1, %c0_1] : memref<3x512xf32, #tpu.memory_space<vmem>>, vector<1x512xf32>
    %c2 = arith.constant 2 : index
    %c0_2 = arith.constant 0 : index
    %2 = vector.load %arg3[%c2, %c0_2] : memref<3x512xf32, #tpu.memory_space<vmem>>, vector<1x512xf32>
    %3 = arith.index_cast %arg0 : i32 to index
    %c0_3 = arith.constant 0 : index
    %4 = memref.load %arg2[%3, %c0_3] : memref<2x12xf32, #tpu.memory_space<smem>>
    %5 = arith.index_cast %arg0 : i32 to index
    %c1_4 = arith.constant 1 : index
    %6 = memref.load %arg2[%5, %c1_4] : memref<2x12xf32, #tpu.memory_space<smem>>
    %7 = arith.index_cast %arg0 : i32 to index
    %c2_5 = arith.constant 2 : index
    %8 = memref.load %arg2[%7, %c2_5] : memref<2x12xf32, #tpu.memory_space<smem>>
    %9 = arith.index_cast %arg0 : i32 to index
    %c3 = arith.constant 3 : index
    %10 = memref.load %arg2[%9, %c3] : memref<2x12xf32, #tpu.memory_space<smem>>
    %11 = arith.index_cast %arg0 : i32 to index
    %c4 = arith.constant 4 : index
    %12 = memref.load %arg2[%11, %c4] : memref<2x12xf32, #tpu.memory_space<smem>>
    %13 = arith.index_cast %arg0 : i32 to index
    %c5 = arith.constant 5 : index
    %14 = memref.load %arg2[%13, %c5] : memref<2x12xf32, #tpu.memory_space<smem>>
    %15 = arith.index_cast %arg0 : i32 to index
    %c6 = arith.constant 6 : index
    %16 = memref.load %arg2[%15, %c6] : memref<2x12xf32, #tpu.memory_space<smem>>
    %17 = arith.index_cast %arg0 : i32 to index
    %c7 = arith.constant 7 : index
    %18 = memref.load %arg2[%17, %c7] : memref<2x12xf32, #tpu.memory_space<smem>>
    %19 = arith.index_cast %arg0 : i32 to index
    %c8 = arith.constant 8 : index
    %20 = memref.load %arg2[%19, %c8] : memref<2x12xf32, #tpu.memory_space<smem>>
    %21 = arith.index_cast %arg0 : i32 to index
    %c9 = arith.constant 9 : index
    %22 = memref.load %arg2[%21, %c9] : memref<2x12xf32, #tpu.memory_space<smem>>
    %23 = arith.index_cast %arg0 : i32 to index
    %c10 = arith.constant 10 : index
    %24 = memref.load %arg2[%23, %c10] : memref<2x12xf32, #tpu.memory_space<smem>>
    %25 = arith.index_cast %arg0 : i32 to index
    %c11 = arith.constant 11 : index
    %26 = memref.load %arg2[%25, %c11] : memref<2x12xf32, #tpu.memory_space<smem>>
    %27 = vector.broadcast %4 : f32 to vector<1x512xf32>
    %28 = arith.mulf %27, %0 : vector<1x512xf32>
    %29 = vector.broadcast %6 : f32 to vector<1x512xf32>
    %30 = arith.mulf %29, %1 : vector<1x512xf32>
    %31 = arith.addf %28, %30 : vector<1x512xf32>
    %32 = vector.broadcast %8 : f32 to vector<1x512xf32>
    %33 = arith.mulf %32, %2 : vector<1x512xf32>
    %34 = arith.addf %31, %33 : vector<1x512xf32>
    %35 = vector.broadcast %10 : f32 to vector<1x512xf32>
    %36 = arith.addf %34, %35 : vector<1x512xf32>
    %37 = vector.broadcast %12 : f32 to vector<1x512xf32>
    %38 = arith.mulf %37, %0 : vector<1x512xf32>
    %39 = vector.broadcast %14 : f32 to vector<1x512xf32>
    %40 = arith.mulf %39, %1 : vector<1x512xf32>
    %41 = arith.addf %38, %40 : vector<1x512xf32>
    %42 = vector.broadcast %16 : f32 to vector<1x512xf32>
    %43 = arith.mulf %42, %2 : vector<1x512xf32>
    %44 = arith.addf %41, %43 : vector<1x512xf32>
    %45 = vector.broadcast %18 : f32 to vector<1x512xf32>
    %46 = arith.addf %44, %45 : vector<1x512xf32>
    %47 = vector.broadcast %20 : f32 to vector<1x512xf32>
    %48 = arith.mulf %47, %0 : vector<1x512xf32>
    %49 = vector.broadcast %22 : f32 to vector<1x512xf32>
    %50 = arith.mulf %49, %1 : vector<1x512xf32>
    %51 = arith.addf %48, %50 : vector<1x512xf32>
    %52 = vector.broadcast %24 : f32 to vector<1x512xf32>
    %53 = arith.mulf %52, %2 : vector<1x512xf32>
    %54 = arith.addf %51, %53 : vector<1x512xf32>
    %55 = vector.broadcast %26 : f32 to vector<1x512xf32>
    %56 = arith.addf %54, %55 : vector<1x512xf32>
    %cst = arith.constant 1.000000e+00 : f32
    %57 = vector.broadcast %cst : f32 to vector<1x512xf32>
    %58 = arith.addf %36, %57 : vector<1x512xf32>
    %cst_6 = arith.constant 8.000000e+00 : f32
    %59 = vector.broadcast %cst_6 : f32 to vector<1x512xf32>
    %60 = arith.mulf %58, %59 : vector<1x512xf32>
    %cst_7 = arith.constant 1.000000e+00 : f32
    %61 = vector.broadcast %cst_7 : f32 to vector<1x512xf32>
    %62 = arith.subf %60, %61 : vector<1x512xf32>
    %cst_8 = arith.constant 5.000000e-01 : f32
    %63 = vector.broadcast %cst_8 : f32 to vector<1x512xf32>
    %64 = arith.mulf %62, %63 : vector<1x512xf32>
    %cst_9 = arith.constant 1.000000e+00 : f32
    %65 = vector.broadcast %cst_9 : f32 to vector<1x512xf32>
    %66 = arith.addf %46, %65 : vector<1x512xf32>
    %cst_10 = arith.constant 8.000000e+00 : f32
    %67 = vector.broadcast %cst_10 : f32 to vector<1x512xf32>
    %68 = arith.mulf %66, %67 : vector<1x512xf32>
    %cst_11 = arith.constant 1.000000e+00 : f32
    %69 = vector.broadcast %cst_11 : f32 to vector<1x512xf32>
    %70 = arith.subf %68, %69 : vector<1x512xf32>
    %cst_12 = arith.constant 5.000000e-01 : f32
    %71 = vector.broadcast %cst_12 : f32 to vector<1x512xf32>
    %72 = arith.mulf %70, %71 : vector<1x512xf32>
    %cst_13 = arith.constant 1.000000e+00 : f32
    %73 = vector.broadcast %cst_13 : f32 to vector<1x512xf32>
    %74 = arith.addf %56, %73 : vector<1x512xf32>
    %cst_14 = arith.constant 8.000000e+00 : f32
    %75 = vector.broadcast %cst_14 : f32 to vector<1x512xf32>
    %76 = arith.mulf %74, %75 : vector<1x512xf32>
    %cst_15 = arith.constant 1.000000e+00 : f32
    %77 = vector.broadcast %cst_15 : f32 to vector<1x512xf32>
    %78 = arith.subf %76, %77 : vector<1x512xf32>
    %cst_16 = arith.constant 5.000000e-01 : f32
    %79 = vector.broadcast %cst_16 : f32 to vector<1x512xf32>
    %80 = arith.mulf %78, %79 : vector<1x512xf32>
    %81 = math.floor %64 : vector<1x512xf32>
    %82 = math.floor %72 : vector<1x512xf32>
    %83 = math.floor %80 : vector<1x512xf32>
    %84 = arith.subf %64, %81 : vector<1x512xf32>
    %cst_17 = arith.constant 1.000000e+00 : f32
    %85 = vector.broadcast %cst_17 : f32 to vector<1x512xf32>
    %86 = arith.subf %85, %84 : vector<1x512xf32>
    %87 = arith.subf %72, %82 : vector<1x512xf32>
    %cst_18 = arith.constant 1.000000e+00 : f32
    %88 = vector.broadcast %cst_18 : f32 to vector<1x512xf32>
    %89 = arith.subf %88, %87 : vector<1x512xf32>
    %90 = arith.subf %80, %83 : vector<1x512xf32>
    %cst_19 = arith.constant 1.000000e+00 : f32
    %91 = vector.broadcast %cst_19 : f32 to vector<1x512xf32>
    %92 = arith.subf %91, %90 : vector<1x512xf32>
    %93 = arith.fptosi %81 : vector<1x512xf32> to vector<1x512xi32>
    %94 = arith.fptosi %82 : vector<1x512xf32> to vector<1x512xi32>
    %95 = arith.fptosi %83 : vector<1x512xf32> to vector<1x512xi32>
    %c0_i32 = arith.constant 0 : i32
    %96 = vector.broadcast %c0_i32 : i32 to vector<1x512xi32>
    %97 = arith.addi %93, %96 : vector<1x512xi32>
    %c0_i32_20 = arith.constant 0 : i32
    %98 = vector.broadcast %c0_i32_20 : i32 to vector<1x512xi32>
    %99 = arith.addi %94, %98 : vector<1x512xi32>
    %c0_i32_21 = arith.constant 0 : i32
    %100 = vector.broadcast %c0_i32_21 : i32 to vector<1x512xi32>
    %101 = arith.addi %95, %100 : vector<1x512xi32>
    %102 = arith.mulf %86, %89 : vector<1x512xf32>
    %103 = arith.mulf %102, %92 : vector<1x512xf32>
    %c0_i32_22 = arith.constant 0 : i32
    %104 = vector.broadcast %c0_i32_22 : i32 to vector<1x512xi32>
    %105 = arith.cmpi sge, %97, %104 : vector<1x512xi32>
    %c8_i32 = arith.constant 8 : i32
    %106 = vector.broadcast %c8_i32 : i32 to vector<1x512xi32>
    %107 = arith.cmpi slt, %97, %106 : vector<1x512xi32>
    %108 = arith.andi %105, %107 : vector<1x512xi1>
    %c0_i32_23 = arith.constant 0 : i32
    %109 = vector.broadcast %c0_i32_23 : i32 to vector<1x512xi32>
    %110 = arith.cmpi sge, %99, %109 : vector<1x512xi32>
    %111 = arith.andi %108, %110 : vector<1x512xi1>
    %c8_i32_24 = arith.constant 8 : i32
    %112 = vector.broadcast %c8_i32_24 : i32 to vector<1x512xi32>
    %113 = arith.cmpi slt, %99, %112 : vector<1x512xi32>
    %114 = arith.andi %111, %113 : vector<1x512xi1>
    %c0_i32_25 = arith.constant 0 : i32
    %115 = vector.broadcast %c0_i32_25 : i32 to vector<1x512xi32>
    %116 = arith.cmpi sge, %101, %115 : vector<1x512xi32>
    %117 = arith.andi %114, %116 : vector<1x512xi1>
    %c8_i32_26 = arith.constant 8 : i32
    %118 = vector.broadcast %c8_i32_26 : i32 to vector<1x512xi32>
    %119 = arith.cmpi slt, %101, %118 : vector<1x512xi32>
    %120 = arith.andi %117, %119 : vector<1x512xi1>
    %cst_27 = arith.constant 0.000000e+00 : f32
    %121 = vector.broadcast %cst_27 : f32 to vector<1x512xf32>
    %122 = arith.select %120, %103, %121 : vector<1x512xi1>, vector<1x512xf32>
    %c0_i32_28 = arith.constant 0 : i32
    %c7_i32 = arith.constant 7 : i32
    %123 = vector.broadcast %c0_i32_28 : i32 to vector<1x512xi32>
    %124 = arith.maxsi %123, %97 : vector<1x512xi32>
    %125 = vector.broadcast %c7_i32 : i32 to vector<1x512xi32>
    %126 = arith.minsi %125, %124 : vector<1x512xi32>
    %c0_i32_29 = arith.constant 0 : i32
    %c7_i32_30 = arith.constant 7 : i32
    %127 = vector.broadcast %c0_i32_29 : i32 to vector<1x512xi32>
    %128 = arith.maxsi %127, %99 : vector<1x512xi32>
    %129 = vector.broadcast %c7_i32_30 : i32 to vector<1x512xi32>
    %130 = arith.minsi %129, %128 : vector<1x512xi32>
    %c0_i32_31 = arith.constant 0 : i32
    %c7_i32_32 = arith.constant 7 : i32
    %131 = vector.broadcast %c0_i32_31 : i32 to vector<1x512xi32>
    %132 = arith.maxsi %131, %101 : vector<1x512xi32>
    %133 = vector.broadcast %c7_i32_32 : i32 to vector<1x512xi32>
    %134 = arith.minsi %133, %132 : vector<1x512xi32>
    %c64_i32 = arith.constant 64 : i32
    %135 = vector.broadcast %c64_i32 : i32 to vector<1x512xi32>
    %136 = arith.muli %134, %135 : vector<1x512xi32>
    %c8_i32_33 = arith.constant 8 : i32
    %137 = vector.broadcast %c8_i32_33 : i32 to vector<1x512xi32>
    %138 = arith.muli %130, %137 : vector<1x512xi32>
    %139 = arith.addi %136, %138 : vector<1x512xi32>
    %140 = arith.addi %139, %126 : vector<1x512xi32>
    %c1_i32 = arith.constant 1 : i32
    %141 = vector.broadcast %c1_i32 : i32 to vector<1x512xi32>
    %142 = arith.addi %93, %141 : vector<1x512xi32>
    %c0_i32_34 = arith.constant 0 : i32
    %143 = vector.broadcast %c0_i32_34 : i32 to vector<1x512xi32>
    %144 = arith.addi %94, %143 : vector<1x512xi32>
    %c0_i32_35 = arith.constant 0 : i32
    %145 = vector.broadcast %c0_i32_35 : i32 to vector<1x512xi32>
    %146 = arith.addi %95, %145 : vector<1x512xi32>
    %147 = arith.mulf %84, %89 : vector<1x512xf32>
    %148 = arith.mulf %147, %92 : vector<1x512xf32>
    %c0_i32_36 = arith.constant 0 : i32
    %149 = vector.broadcast %c0_i32_36 : i32 to vector<1x512xi32>
    %150 = arith.cmpi sge, %142, %149 : vector<1x512xi32>
    %c8_i32_37 = arith.constant 8 : i32
    %151 = vector.broadcast %c8_i32_37 : i32 to vector<1x512xi32>
    %152 = arith.cmpi slt, %142, %151 : vector<1x512xi32>
    %153 = arith.andi %150, %152 : vector<1x512xi1>
    %c0_i32_38 = arith.constant 0 : i32
    %154 = vector.broadcast %c0_i32_38 : i32 to vector<1x512xi32>
    %155 = arith.cmpi sge, %144, %154 : vector<1x512xi32>
    %156 = arith.andi %153, %155 : vector<1x512xi1>
    %c8_i32_39 = arith.constant 8 : i32
    %157 = vector.broadcast %c8_i32_39 : i32 to vector<1x512xi32>
    %158 = arith.cmpi slt, %144, %157 : vector<1x512xi32>
    %159 = arith.andi %156, %158 : vector<1x512xi1>
    %c0_i32_40 = arith.constant 0 : i32
    %160 = vector.broadcast %c0_i32_40 : i32 to vector<1x512xi32>
    %161 = arith.cmpi sge, %146, %160 : vector<1x512xi32>
    %162 = arith.andi %159, %161 : vector<1x512xi1>
    %c8_i32_41 = arith.constant 8 : i32
    %163 = vector.broadcast %c8_i32_41 : i32 to vector<1x512xi32>
    %164 = arith.cmpi slt, %146, %163 : vector<1x512xi32>
    %165 = arith.andi %162, %164 : vector<1x512xi1>
    %cst_42 = arith.constant 0.000000e+00 : f32
    %166 = vector.broadcast %cst_42 : f32 to vector<1x512xf32>
    %167 = arith.select %165, %148, %166 : vector<1x512xi1>, vector<1x512xf32>
    %c0_i32_43 = arith.constant 0 : i32
    %c7_i32_44 = arith.constant 7 : i32
    %168 = vector.broadcast %c0_i32_43 : i32 to vector<1x512xi32>
    %169 = arith.maxsi %168, %142 : vector<1x512xi32>
    %170 = vector.broadcast %c7_i32_44 : i32 to vector<1x512xi32>
    %171 = arith.minsi %170, %169 : vector<1x512xi32>
    %c0_i32_45 = arith.constant 0 : i32
    %c7_i32_46 = arith.constant 7 : i32
    %172 = vector.broadcast %c0_i32_45 : i32 to vector<1x512xi32>
    %173 = arith.maxsi %172, %144 : vector<1x512xi32>
    %174 = vector.broadcast %c7_i32_46 : i32 to vector<1x512xi32>
    %175 = arith.minsi %174, %173 : vector<1x512xi32>
    %c0_i32_47 = arith.constant 0 : i32
    %c7_i32_48 = arith.constant 7 : i32
    %176 = vector.broadcast %c0_i32_47 : i32 to vector<1x512xi32>
    %177 = arith.maxsi %176, %146 : vector<1x512xi32>
    %178 = vector.broadcast %c7_i32_48 : i32 to vector<1x512xi32>
    %179 = arith.minsi %178, %177 : vector<1x512xi32>
    %c64_i32_49 = arith.constant 64 : i32
    %180 = vector.broadcast %c64_i32_49 : i32 to vector<1x512xi32>
    %181 = arith.muli %179, %180 : vector<1x512xi32>
    %c8_i32_50 = arith.constant 8 : i32
    %182 = vector.broadcast %c8_i32_50 : i32 to vector<1x512xi32>
    %183 = arith.muli %175, %182 : vector<1x512xi32>
    %184 = arith.addi %181, %183 : vector<1x512xi32>
    %185 = arith.addi %184, %171 : vector<1x512xi32>
    %c0_i32_51 = arith.constant 0 : i32
    %186 = vector.broadcast %c0_i32_51 : i32 to vector<1x512xi32>
    %187 = arith.addi %93, %186 : vector<1x512xi32>
    %c1_i32_52 = arith.constant 1 : i32
    %188 = vector.broadcast %c1_i32_52 : i32 to vector<1x512xi32>
    %189 = arith.addi %94, %188 : vector<1x512xi32>
    %c0_i32_53 = arith.constant 0 : i32
    %190 = vector.broadcast %c0_i32_53 : i32 to vector<1x512xi32>
    %191 = arith.addi %95, %190 : vector<1x512xi32>
    %192 = arith.mulf %86, %87 : vector<1x512xf32>
    %193 = arith.mulf %192, %92 : vector<1x512xf32>
    %c0_i32_54 = arith.constant 0 : i32
    %194 = vector.broadcast %c0_i32_54 : i32 to vector<1x512xi32>
    %195 = arith.cmpi sge, %187, %194 : vector<1x512xi32>
    %c8_i32_55 = arith.constant 8 : i32
    %196 = vector.broadcast %c8_i32_55 : i32 to vector<1x512xi32>
    %197 = arith.cmpi slt, %187, %196 : vector<1x512xi32>
    %198 = arith.andi %195, %197 : vector<1x512xi1>
    %c0_i32_56 = arith.constant 0 : i32
    %199 = vector.broadcast %c0_i32_56 : i32 to vector<1x512xi32>
    %200 = arith.cmpi sge, %189, %199 : vector<1x512xi32>
    %201 = arith.andi %198, %200 : vector<1x512xi1>
    %c8_i32_57 = arith.constant 8 : i32
    %202 = vector.broadcast %c8_i32_57 : i32 to vector<1x512xi32>
    %203 = arith.cmpi slt, %189, %202 : vector<1x512xi32>
    %204 = arith.andi %201, %203 : vector<1x512xi1>
    %c0_i32_58 = arith.constant 0 : i32
    %205 = vector.broadcast %c0_i32_58 : i32 to vector<1x512xi32>
    %206 = arith.cmpi sge, %191, %205 : vector<1x512xi32>
    %207 = arith.andi %204, %206 : vector<1x512xi1>
    %c8_i32_59 = arith.constant 8 : i32
    %208 = vector.broadcast %c8_i32_59 : i32 to vector<1x512xi32>
    %209 = arith.cmpi slt, %191, %208 : vector<1x512xi32>
    %210 = arith.andi %207, %209 : vector<1x512xi1>
    %cst_60 = arith.constant 0.000000e+00 : f32
    %211 = vector.broadcast %cst_60 : f32 to vector<1x512xf32>
    %212 = arith.select %210, %193, %211 : vector<1x512xi1>, vector<1x512xf32>
    %c0_i32_61 = arith.constant 0 : i32
    %c7_i32_62 = arith.constant 7 : i32
    %213 = vector.broadcast %c0_i32_61 : i32 to vector<1x512xi32>
    %214 = arith.maxsi %213, %187 : vector<1x512xi32>
    %215 = vector.broadcast %c7_i32_62 : i32 to vector<1x512xi32>
    %216 = arith.minsi %215, %214 : vector<1x512xi32>
    %c0_i32_63 = arith.constant 0 : i32
    %c7_i32_64 = arith.constant 7 : i32
    %217 = vector.broadcast %c0_i32_63 : i32 to vector<1x512xi32>
    %218 = arith.maxsi %217, %189 : vector<1x512xi32>
    %219 = vector.broadcast %c7_i32_64 : i32 to vector<1x512xi32>
    %220 = arith.minsi %219, %218 : vector<1x512xi32>
    %c0_i32_65 = arith.constant 0 : i32
    %c7_i32_66 = arith.constant 7 : i32
    %221 = vector.broadcast %c0_i32_65 : i32 to vector<1x512xi32>
    %222 = arith.maxsi %221, %191 : vector<1x512xi32>
    %223 = vector.broadcast %c7_i32_66 : i32 to vector<1x512xi32>
    %224 = arith.minsi %223, %222 : vector<1x512xi32>
    %c64_i32_67 = arith.constant 64 : i32
    %225 = vector.broadcast %c64_i32_67 : i32 to vector<1x512xi32>
    %226 = arith.muli %224, %225 : vector<1x512xi32>
    %c8_i32_68 = arith.constant 8 : i32
    %227 = vector.broadcast %c8_i32_68 : i32 to vector<1x512xi32>
    %228 = arith.muli %220, %227 : vector<1x512xi32>
    %229 = arith.addi %226, %228 : vector<1x512xi32>
    %230 = arith.addi %229, %216 : vector<1x512xi32>
    %c1_i32_69 = arith.constant 1 : i32
    %231 = vector.broadcast %c1_i32_69 : i32 to vector<1x512xi32>
    %232 = arith.addi %93, %231 : vector<1x512xi32>
    %c1_i32_70 = arith.constant 1 : i32
    %233 = vector.broadcast %c1_i32_70 : i32 to vector<1x512xi32>
    %234 = arith.addi %94, %233 : vector<1x512xi32>
    %c0_i32_71 = arith.constant 0 : i32
    %235 = vector.broadcast %c0_i32_71 : i32 to vector<1x512xi32>
    %236 = arith.addi %95, %235 : vector<1x512xi32>
    %237 = arith.mulf %84, %87 : vector<1x512xf32>
    %238 = arith.mulf %237, %92 : vector<1x512xf32>
    %c0_i32_72 = arith.constant 0 : i32
    %239 = vector.broadcast %c0_i32_72 : i32 to vector<1x512xi32>
    %240 = arith.cmpi sge, %232, %239 : vector<1x512xi32>
    %c8_i32_73 = arith.constant 8 : i32
    %241 = vector.broadcast %c8_i32_73 : i32 to vector<1x512xi32>
    %242 = arith.cmpi slt, %232, %241 : vector<1x512xi32>
    %243 = arith.andi %240, %242 : vector<1x512xi1>
    %c0_i32_74 = arith.constant 0 : i32
    %244 = vector.broadcast %c0_i32_74 : i32 to vector<1x512xi32>
    %245 = arith.cmpi sge, %234, %244 : vector<1x512xi32>
    %246 = arith.andi %243, %245 : vector<1x512xi1>
    %c8_i32_75 = arith.constant 8 : i32
    %247 = vector.broadcast %c8_i32_75 : i32 to vector<1x512xi32>
    %248 = arith.cmpi slt, %234, %247 : vector<1x512xi32>
    %249 = arith.andi %246, %248 : vector<1x512xi1>
    %c0_i32_76 = arith.constant 0 : i32
    %250 = vector.broadcast %c0_i32_76 : i32 to vector<1x512xi32>
    %251 = arith.cmpi sge, %236, %250 : vector<1x512xi32>
    %252 = arith.andi %249, %251 : vector<1x512xi1>
    %c8_i32_77 = arith.constant 8 : i32
    %253 = vector.broadcast %c8_i32_77 : i32 to vector<1x512xi32>
    %254 = arith.cmpi slt, %236, %253 : vector<1x512xi32>
    %255 = arith.andi %252, %254 : vector<1x512xi1>
    %cst_78 = arith.constant 0.000000e+00 : f32
    %256 = vector.broadcast %cst_78 : f32 to vector<1x512xf32>
    %257 = arith.select %255, %238, %256 : vector<1x512xi1>, vector<1x512xf32>
    %c0_i32_79 = arith.constant 0 : i32
    %c7_i32_80 = arith.constant 7 : i32
    %258 = vector.broadcast %c0_i32_79 : i32 to vector<1x512xi32>
    %259 = arith.maxsi %258, %232 : vector<1x512xi32>
    %260 = vector.broadcast %c7_i32_80 : i32 to vector<1x512xi32>
    %261 = arith.minsi %260, %259 : vector<1x512xi32>
    %c0_i32_81 = arith.constant 0 : i32
    %c7_i32_82 = arith.constant 7 : i32
    %262 = vector.broadcast %c0_i32_81 : i32 to vector<1x512xi32>
    %263 = arith.maxsi %262, %234 : vector<1x512xi32>
    %264 = vector.broadcast %c7_i32_82 : i32 to vector<1x512xi32>
    %265 = arith.minsi %264, %263 : vector<1x512xi32>
    %c0_i32_83 = arith.constant 0 : i32
    %c7_i32_84 = arith.constant 7 : i32
    %266 = vector.broadcast %c0_i32_83 : i32 to vector<1x512xi32>
    %267 = arith.maxsi %266, %236 : vector<1x512xi32>
    %268 = vector.broadcast %c7_i32_84 : i32 to vector<1x512xi32>
    %269 = arith.minsi %268, %267 : vector<1x512xi32>
    %c64_i32_85 = arith.constant 64 : i32
    %270 = vector.broadcast %c64_i32_85 : i32 to vector<1x512xi32>
    %271 = arith.muli %269, %270 : vector<1x512xi32>
    %c8_i32_86 = arith.constant 8 : i32
    %272 = vector.broadcast %c8_i32_86 : i32 to vector<1x512xi32>
    %273 = arith.muli %265, %272 : vector<1x512xi32>
    %274 = arith.addi %271, %273 : vector<1x512xi32>
    %275 = arith.addi %274, %261 : vector<1x512xi32>
    %c0_i32_87 = arith.constant 0 : i32
    %276 = vector.broadcast %c0_i32_87 : i32 to vector<1x512xi32>
    %277 = arith.addi %93, %276 : vector<1x512xi32>
    %c0_i32_88 = arith.constant 0 : i32
    %278 = vector.broadcast %c0_i32_88 : i32 to vector<1x512xi32>
    %279 = arith.addi %94, %278 : vector<1x512xi32>
    %c1_i32_89 = arith.constant 1 : i32
    %280 = vector.broadcast %c1_i32_89 : i32 to vector<1x512xi32>
    %281 = arith.addi %95, %280 : vector<1x512xi32>
    %282 = arith.mulf %86, %89 : vector<1x512xf32>
    %283 = arith.mulf %282, %90 : vector<1x512xf32>
    %c0_i32_90 = arith.constant 0 : i32
    %284 = vector.broadcast %c0_i32_90 : i32 to vector<1x512xi32>
    %285 = arith.cmpi sge, %277, %284 : vector<1x512xi32>
    %c8_i32_91 = arith.constant 8 : i32
    %286 = vector.broadcast %c8_i32_91 : i32 to vector<1x512xi32>
    %287 = arith.cmpi slt, %277, %286 : vector<1x512xi32>
    %288 = arith.andi %285, %287 : vector<1x512xi1>
    %c0_i32_92 = arith.constant 0 : i32
    %289 = vector.broadcast %c0_i32_92 : i32 to vector<1x512xi32>
    %290 = arith.cmpi sge, %279, %289 : vector<1x512xi32>
    %291 = arith.andi %288, %290 : vector<1x512xi1>
    %c8_i32_93 = arith.constant 8 : i32
    %292 = vector.broadcast %c8_i32_93 : i32 to vector<1x512xi32>
    %293 = arith.cmpi slt, %279, %292 : vector<1x512xi32>
    %294 = arith.andi %291, %293 : vector<1x512xi1>
    %c0_i32_94 = arith.constant 0 : i32
    %295 = vector.broadcast %c0_i32_94 : i32 to vector<1x512xi32>
    %296 = arith.cmpi sge, %281, %295 : vector<1x512xi32>
    %297 = arith.andi %294, %296 : vector<1x512xi1>
    %c8_i32_95 = arith.constant 8 : i32
    %298 = vector.broadcast %c8_i32_95 : i32 to vector<1x512xi32>
    %299 = arith.cmpi slt, %281, %298 : vector<1x512xi32>
    %300 = arith.andi %297, %299 : vector<1x512xi1>
    %cst_96 = arith.constant 0.000000e+00 : f32
    %301 = vector.broadcast %cst_96 : f32 to vector<1x512xf32>
    %302 = arith.select %300, %283, %301 : vector<1x512xi1>, vector<1x512xf32>
    %c0_i32_97 = arith.constant 0 : i32
    %c7_i32_98 = arith.constant 7 : i32
    %303 = vector.broadcast %c0_i32_97 : i32 to vector<1x512xi32>
    %304 = arith.maxsi %303, %277 : vector<1x512xi32>
    %305 = vector.broadcast %c7_i32_98 : i32 to vector<1x512xi32>
    %306 = arith.minsi %305, %304 : vector<1x512xi32>
    %c0_i32_99 = arith.constant 0 : i32
    %c7_i32_100 = arith.constant 7 : i32
    %307 = vector.broadcast %c0_i32_99 : i32 to vector<1x512xi32>
    %308 = arith.maxsi %307, %279 : vector<1x512xi32>
    %309 = vector.broadcast %c7_i32_100 : i32 to vector<1x512xi32>
    %310 = arith.minsi %309, %308 : vector<1x512xi32>
    %c0_i32_101 = arith.constant 0 : i32
    %c7_i32_102 = arith.constant 7 : i32
    %311 = vector.broadcast %c0_i32_101 : i32 to vector<1x512xi32>
    %312 = arith.maxsi %311, %281 : vector<1x512xi32>
    %313 = vector.broadcast %c7_i32_102 : i32 to vector<1x512xi32>
    %314 = arith.minsi %313, %312 : vector<1x512xi32>
    %c64_i32_103 = arith.constant 64 : i32
    %315 = vector.broadcast %c64_i32_103 : i32 to vector<1x512xi32>
    %316 = arith.muli %314, %315 : vector<1x512xi32>
    %c8_i32_104 = arith.constant 8 : i32
    %317 = vector.broadcast %c8_i32_104 : i32 to vector<1x512xi32>
    %318 = arith.muli %310, %317 : vector<1x512xi32>
    %319 = arith.addi %316, %318 : vector<1x512xi32>
    %320 = arith.addi %319, %306 : vector<1x512xi32>
    %c1_i32_105 = arith.constant 1 : i32
    %321 = vector.broadcast %c1_i32_105 : i32 to vector<1x512xi32>
    %322 = arith.addi %93, %321 : vector<1x512xi32>
    %c0_i32_106 = arith.constant 0 : i32
    %323 = vector.broadcast %c0_i32_106 : i32 to vector<1x512xi32>
    %324 = arith.addi %94, %323 : vector<1x512xi32>
    %c1_i32_107 = arith.constant 1 : i32
    %325 = vector.broadcast %c1_i32_107 : i32 to vector<1x512xi32>
    %326 = arith.addi %95, %325 : vector<1x512xi32>
    %327 = arith.mulf %84, %89 : vector<1x512xf32>
    %328 = arith.mulf %327, %90 : vector<1x512xf32>
    %c0_i32_108 = arith.constant 0 : i32
    %329 = vector.broadcast %c0_i32_108 : i32 to vector<1x512xi32>
    %330 = arith.cmpi sge, %322, %329 : vector<1x512xi32>
    %c8_i32_109 = arith.constant 8 : i32
    %331 = vector.broadcast %c8_i32_109 : i32 to vector<1x512xi32>
    %332 = arith.cmpi slt, %322, %331 : vector<1x512xi32>
    %333 = arith.andi %330, %332 : vector<1x512xi1>
    %c0_i32_110 = arith.constant 0 : i32
    %334 = vector.broadcast %c0_i32_110 : i32 to vector<1x512xi32>
    %335 = arith.cmpi sge, %324, %334 : vector<1x512xi32>
    %336 = arith.andi %333, %335 : vector<1x512xi1>
    %c8_i32_111 = arith.constant 8 : i32
    %337 = vector.broadcast %c8_i32_111 : i32 to vector<1x512xi32>
    %338 = arith.cmpi slt, %324, %337 : vector<1x512xi32>
    %339 = arith.andi %336, %338 : vector<1x512xi1>
    %c0_i32_112 = arith.constant 0 : i32
    %340 = vector.broadcast %c0_i32_112 : i32 to vector<1x512xi32>
    %341 = arith.cmpi sge, %326, %340 : vector<1x512xi32>
    %342 = arith.andi %339, %341 : vector<1x512xi1>
    %c8_i32_113 = arith.constant 8 : i32
    %343 = vector.broadcast %c8_i32_113 : i32 to vector<1x512xi32>
    %344 = arith.cmpi slt, %326, %343 : vector<1x512xi32>
    %345 = arith.andi %342, %344 : vector<1x512xi1>
    %cst_114 = arith.constant 0.000000e+00 : f32
    %346 = vector.broadcast %cst_114 : f32 to vector<1x512xf32>
    %347 = arith.select %345, %328, %346 : vector<1x512xi1>, vector<1x512xf32>
    %c0_i32_115 = arith.constant 0 : i32
    %c7_i32_116 = arith.constant 7 : i32
    %348 = vector.broadcast %c0_i32_115 : i32 to vector<1x512xi32>
    %349 = arith.maxsi %348, %322 : vector<1x512xi32>
    %350 = vector.broadcast %c7_i32_116 : i32 to vector<1x512xi32>
    %351 = arith.minsi %350, %349 : vector<1x512xi32>
    %c0_i32_117 = arith.constant 0 : i32
    %c7_i32_118 = arith.constant 7 : i32
    %352 = vector.broadcast %c0_i32_117 : i32 to vector<1x512xi32>
    %353 = arith.maxsi %352, %324 : vector<1x512xi32>
    %354 = vector.broadcast %c7_i32_118 : i32 to vector<1x512xi32>
    %355 = arith.minsi %354, %353 : vector<1x512xi32>
    %c0_i32_119 = arith.constant 0 : i32
    %c7_i32_120 = arith.constant 7 : i32
    %356 = vector.broadcast %c0_i32_119 : i32 to vector<1x512xi32>
    %357 = arith.maxsi %356, %326 : vector<1x512xi32>
    %358 = vector.broadcast %c7_i32_120 : i32 to vector<1x512xi32>
    %359 = arith.minsi %358, %357 : vector<1x512xi32>
    %c64_i32_121 = arith.constant 64 : i32
    %360 = vector.broadcast %c64_i32_121 : i32 to vector<1x512xi32>
    %361 = arith.muli %359, %360 : vector<1x512xi32>
    %c8_i32_122 = arith.constant 8 : i32
    %362 = vector.broadcast %c8_i32_122 : i32 to vector<1x512xi32>
    %363 = arith.muli %355, %362 : vector<1x512xi32>
    %364 = arith.addi %361, %363 : vector<1x512xi32>
    %365 = arith.addi %364, %351 : vector<1x512xi32>
    %c0_i32_123 = arith.constant 0 : i32
    %366 = vector.broadcast %c0_i32_123 : i32 to vector<1x512xi32>
    %367 = arith.addi %93, %366 : vector<1x512xi32>
    %c1_i32_124 = arith.constant 1 : i32
    %368 = vector.broadcast %c1_i32_124 : i32 to vector<1x512xi32>
    %369 = arith.addi %94, %368 : vector<1x512xi32>
    %c1_i32_125 = arith.constant 1 : i32
    %370 = vector.broadcast %c1_i32_125 : i32 to vector<1x512xi32>
    %371 = arith.addi %95, %370 : vector<1x512xi32>
    %372 = arith.mulf %86, %87 : vector<1x512xf32>
    %373 = arith.mulf %372, %90 : vector<1x512xf32>
    %c0_i32_126 = arith.constant 0 : i32
    %374 = vector.broadcast %c0_i32_126 : i32 to vector<1x512xi32>
    %375 = arith.cmpi sge, %367, %374 : vector<1x512xi32>
    %c8_i32_127 = arith.constant 8 : i32
    %376 = vector.broadcast %c8_i32_127 : i32 to vector<1x512xi32>
    %377 = arith.cmpi slt, %367, %376 : vector<1x512xi32>
    %378 = arith.andi %375, %377 : vector<1x512xi1>
    %c0_i32_128 = arith.constant 0 : i32
    %379 = vector.broadcast %c0_i32_128 : i32 to vector<1x512xi32>
    %380 = arith.cmpi sge, %369, %379 : vector<1x512xi32>
    %381 = arith.andi %378, %380 : vector<1x512xi1>
    %c8_i32_129 = arith.constant 8 : i32
    %382 = vector.broadcast %c8_i32_129 : i32 to vector<1x512xi32>
    %383 = arith.cmpi slt, %369, %382 : vector<1x512xi32>
    %384 = arith.andi %381, %383 : vector<1x512xi1>
    %c0_i32_130 = arith.constant 0 : i32
    %385 = vector.broadcast %c0_i32_130 : i32 to vector<1x512xi32>
    %386 = arith.cmpi sge, %371, %385 : vector<1x512xi32>
    %387 = arith.andi %384, %386 : vector<1x512xi1>
    %c8_i32_131 = arith.constant 8 : i32
    %388 = vector.broadcast %c8_i32_131 : i32 to vector<1x512xi32>
    %389 = arith.cmpi slt, %371, %388 : vector<1x512xi32>
    %390 = arith.andi %387, %389 : vector<1x512xi1>
    %cst_132 = arith.constant 0.000000e+00 : f32
    %391 = vector.broadcast %cst_132 : f32 to vector<1x512xf32>
    %392 = arith.select %390, %373, %391 : vector<1x512xi1>, vector<1x512xf32>
    %c0_i32_133 = arith.constant 0 : i32
    %c7_i32_134 = arith.constant 7 : i32
    %393 = vector.broadcast %c0_i32_133 : i32 to vector<1x512xi32>
    %394 = arith.maxsi %393, %367 : vector<1x512xi32>
    %395 = vector.broadcast %c7_i32_134 : i32 to vector<1x512xi32>
    %396 = arith.minsi %395, %394 : vector<1x512xi32>
    %c0_i32_135 = arith.constant 0 : i32
    %c7_i32_136 = arith.constant 7 : i32
    %397 = vector.broadcast %c0_i32_135 : i32 to vector<1x512xi32>
    %398 = arith.maxsi %397, %369 : vector<1x512xi32>
    %399 = vector.broadcast %c7_i32_136 : i32 to vector<1x512xi32>
    %400 = arith.minsi %399, %398 : vector<1x512xi32>
    %c0_i32_137 = arith.constant 0 : i32
    %c7_i32_138 = arith.constant 7 : i32
    %401 = vector.broadcast %c0_i32_137 : i32 to vector<1x512xi32>
    %402 = arith.maxsi %401, %371 : vector<1x512xi32>
    %403 = vector.broadcast %c7_i32_138 : i32 to vector<1x512xi32>
    %404 = arith.minsi %403, %402 : vector<1x512xi32>
    %c64_i32_139 = arith.constant 64 : i32
    %405 = vector.broadcast %c64_i32_139 : i32 to vector<1x512xi32>
    %406 = arith.muli %404, %405 : vector<1x512xi32>
    %c8_i32_140 = arith.constant 8 : i32
    %407 = vector.broadcast %c8_i32_140 : i32 to vector<1x512xi32>
    %408 = arith.muli %400, %407 : vector<1x512xi32>
    %409 = arith.addi %406, %408 : vector<1x512xi32>
    %410 = arith.addi %409, %396 : vector<1x512xi32>
    %c1_i32_141 = arith.constant 1 : i32
    %411 = vector.broadcast %c1_i32_141 : i32 to vector<1x512xi32>
    %412 = arith.addi %93, %411 : vector<1x512xi32>
    %c1_i32_142 = arith.constant 1 : i32
    %413 = vector.broadcast %c1_i32_142 : i32 to vector<1x512xi32>
    %414 = arith.addi %94, %413 : vector<1x512xi32>
    %c1_i32_143 = arith.constant 1 : i32
    %415 = vector.broadcast %c1_i32_143 : i32 to vector<1x512xi32>
    %416 = arith.addi %95, %415 : vector<1x512xi32>
    %417 = arith.mulf %84, %87 : vector<1x512xf32>
    %418 = arith.mulf %417, %90 : vector<1x512xf32>
    %c0_i32_144 = arith.constant 0 : i32
    %419 = vector.broadcast %c0_i32_144 : i32 to vector<1x512xi32>
    %420 = arith.cmpi sge, %412, %419 : vector<1x512xi32>
    %c8_i32_145 = arith.constant 8 : i32
    %421 = vector.broadcast %c8_i32_145 : i32 to vector<1x512xi32>
    %422 = arith.cmpi slt, %412, %421 : vector<1x512xi32>
    %423 = arith.andi %420, %422 : vector<1x512xi1>
    %c0_i32_146 = arith.constant 0 : i32
    %424 = vector.broadcast %c0_i32_146 : i32 to vector<1x512xi32>
    %425 = arith.cmpi sge, %414, %424 : vector<1x512xi32>
    %426 = arith.andi %423, %425 : vector<1x512xi1>
    %c8_i32_147 = arith.constant 8 : i32
    %427 = vector.broadcast %c8_i32_147 : i32 to vector<1x512xi32>
    %428 = arith.cmpi slt, %414, %427 : vector<1x512xi32>
    %429 = arith.andi %426, %428 : vector<1x512xi1>
    %c0_i32_148 = arith.constant 0 : i32
    %430 = vector.broadcast %c0_i32_148 : i32 to vector<1x512xi32>
    %431 = arith.cmpi sge, %416, %430 : vector<1x512xi32>
    %432 = arith.andi %429, %431 : vector<1x512xi1>
    %c8_i32_149 = arith.constant 8 : i32
    %433 = vector.broadcast %c8_i32_149 : i32 to vector<1x512xi32>
    %434 = arith.cmpi slt, %416, %433 : vector<1x512xi32>
    %435 = arith.andi %432, %434 : vector<1x512xi1>
    %cst_150 = arith.constant 0.000000e+00 : f32
    %436 = vector.broadcast %cst_150 : f32 to vector<1x512xf32>
    %437 = arith.select %435, %418, %436 : vector<1x512xi1>, vector<1x512xf32>
    %c0_i32_151 = arith.constant 0 : i32
    %c7_i32_152 = arith.constant 7 : i32
    %438 = vector.broadcast %c0_i32_151 : i32 to vector<1x512xi32>
    %439 = arith.maxsi %438, %412 : vector<1x512xi32>
    %440 = vector.broadcast %c7_i32_152 : i32 to vector<1x512xi32>
    %441 = arith.minsi %440, %439 : vector<1x512xi32>
    %c0_i32_153 = arith.constant 0 : i32
    %c7_i32_154 = arith.constant 7 : i32
    %442 = vector.broadcast %c0_i32_153 : i32 to vector<1x512xi32>
    %443 = arith.maxsi %442, %414 : vector<1x512xi32>
    %444 = vector.broadcast %c7_i32_154 : i32 to vector<1x512xi32>
    %445 = arith.minsi %444, %443 : vector<1x512xi32>
    %c0_i32_155 = arith.constant 0 : i32
    %c7_i32_156 = arith.constant 7 : i32
    %446 = vector.broadcast %c0_i32_155 : i32 to vector<1x512xi32>
    %447 = arith.maxsi %446, %416 : vector<1x512xi32>
    %448 = vector.broadcast %c7_i32_156 : i32 to vector<1x512xi32>
    %449 = arith.minsi %448, %447 : vector<1x512xi32>
    %c64_i32_157 = arith.constant 64 : i32
    %450 = vector.broadcast %c64_i32_157 : i32 to vector<1x512xi32>
    %451 = arith.muli %449, %450 : vector<1x512xi32>
    %c8_i32_158 = arith.constant 8 : i32
    %452 = vector.broadcast %c8_i32_158 : i32 to vector<1x512xi32>
    %453 = arith.muli %445, %452 : vector<1x512xi32>
    %454 = arith.addi %451, %453 : vector<1x512xi32>
    %455 = arith.addi %454, %441 : vector<1x512xi32>
    %456 = tpu.concatenate %122, %167, %212, %257, %302, %347, %392, %437 in 0 : vector<1x512xf32>, vector<1x512xf32>, vector<1x512xf32>, vector<1x512xf32>, vector<1x512xf32>, vector<1x512xf32>, vector<1x512xf32>, vector<1x512xf32> -> vector<8x512xf32>
    %c0_159 = arith.constant 0 : index
    %c0_160 = arith.constant 0 : index
    %c0_161 = arith.constant 0 : index
    %457 = vector.load %arg4[%c0_159, %c0_160, %c0_161] : memref<1x8x512xf32, #tpu.memory_space<vmem>>, vector<1x8x512xf32>
    %458 = vector.shape_cast %457 : vector<1x8x512xf32> to vector<8x512xf32>
    %459 = vector.shape_cast %456 : vector<8x512xf32> to vector<1x8x512xf32>
    tpu.vector_store %arg4[%c0_159, %c0_160, %c0_161], %459 {strides = array<i32>} : memref<1x8x512xf32, #tpu.memory_space<vmem>>, vector<1x8x512xf32>,
    %460 = tpu.concatenate %140, %185, %230, %275, %320, %365, %410, %455 in 0 : vector<1x512xi32>, vector<1x512xi32>, vector<1x512xi32>, vector<1x512xi32>, vector<1x512xi32>, vector<1x512xi32>, vector<1x512xi32>, vector<1x512xi32> -> vector<8x512xi32>
    %c0_162 = arith.constant 0 : index
    %c0_163 = arith.constant 0 : index
    %c0_164 = arith.constant 0 : index
    %461 = vector.load %arg5[%c0_162, %c0_163, %c0_164] : memref<1x8x512xi32, #tpu.memory_space<vmem>>, vector<1x8x512xi32>
    %462 = vector.shape_cast %461 : vector<1x8x512xi32> to vector<8x512xi32>
    %463 = vector.shape_cast %460 : vector<8x512xi32> to vector<1x8x512xi32>
    tpu.vector_store %arg5[%c0_162, %c0_163, %c0_164], %463 {strides = array<i32>} : memref<1x8x512xi32, #tpu.memory_space<vmem>>, vector<1x8x512xi32>,
    return
  }
  func.func @transform_0(%arg0: i32, %arg1: i32) -> (i32, i32) {
    %c0_i32 = arith.constant 0 : i32
    %c0_i32_0 = arith.constant 0 : i32
    %c0_i32_1 = arith.constant 0 : i32
    return %c0_i32, %c0_i32_0 : i32, i32
  }
  func.func @transform_1(%arg0: i32, %arg1: i32) -> (i32, i32) {
    %c0_i32 = arith.constant 0 : i32
    %c0_i32_0 = arith.constant 0 : i32
    return %c0_i32, %arg1 : i32, i32
  }
  func.func @transform_2(%arg0: i32, %arg1: i32) -> (i32, i32, i32) {
    %c0_i32 = arith.constant 0 : i32
    %c0_i32_0 = arith.constant 0 : i32
    return %arg0, %c0_i32, %arg1 : i32, i32, i32
  }
  func.func @transform_3(%arg0: i32, %arg1: i32) -> (i32, i32, i32) {
    %c0_i32 = arith.constant 0 : i32
    %c0_i32_0 = arith.constant 0 : i32
    return %arg0, %c0_i32, %arg1 : i32, i32, i32
  }
}

module attributes {stable_mosaic.version = 11 : i64} {
  func.func @_combine_kernel(%arg0: i32, %arg1: i32, %arg2: memref<1x8x2x512xf32, #tpu.memory_space<vmem>>, %arg3: memref<1x8x512xf32, #tpu.memory_space<vmem>>, %arg4: memref<1x2x512xf32, #tpu.memory_space<vmem>>, %arg5: memref<1x2x512xf32, #tpu.memory_space<vmem>>) attributes {dimension_semantics = [#tpu.dimension_semantics<parallel>, #tpu.dimension_semantics<parallel>], iteration_bounds = array<i64: 2, 1>, scalar_prefetch = 0 : i64, scratch_operands = 0 : i64, tpu.core_type = #tpu.core_type<tc>, window_params = [{transform_indices = @transform_0, window_bounds = array<i64: 1, 8, 2, 512>}, {transform_indices = @transform_1, window_bounds = array<i64: 1, 8, 512>}, {transform_indices = @transform_2, window_bounds = array<i64: 1, 2, 512>}, {transform_indices = @transform_3, window_bounds = array<i64: 1, 2, 512>}]} {
    %c0 = arith.constant 0 : index
    %c0_0 = arith.constant 0 : index
    %c0_1 = arith.constant 0 : index
    %0 = vector.load %arg4[%c0, %c0_0, %c0_1] : memref<1x2x512xf32, #tpu.memory_space<vmem>>, vector<1x2x512xf32>
    %1 = vector.shape_cast %0 : vector<1x2x512xf32> to vector<2x512xf32>
    %c0_2 = arith.constant 0 : index
    %c0_3 = arith.constant 0 : index
    %c0_4 = arith.constant 0 : index
    %c0_5 = arith.constant 0 : index
    %2 = vector.load %arg2[%c0_2, %c0_3, %c0_4, %c0_5] : memref<1x8x2x512xf32, #tpu.memory_space<vmem>>, vector<1x1x2x512xf32>
    %3 = vector.shape_cast %2 : vector<1x1x2x512xf32> to vector<2x512xf32>
    %c0_6 = arith.constant 0 : index
    %c0_7 = arith.constant 0 : index
    %c0_8 = arith.constant 0 : index
    %4 = vector.load %arg3[%c0_6, %c0_7, %c0_8] : memref<1x8x512xf32, #tpu.memory_space<vmem>>, vector<1x1x512xf32>
    %5 = vector.shape_cast %4 : vector<1x1x512xf32> to vector<1x512xf32>
    %6 = vector.broadcast %5 : vector<1x512xf32> to vector<2x512xf32>
    %7 = arith.mulf %3, %6 : vector<2x512xf32>
    %8 = arith.addf %1, %7 : vector<2x512xf32>
    %c0_9 = arith.constant 0 : index
    %c1 = arith.constant 1 : index
    %c0_10 = arith.constant 0 : index
    %c0_11 = arith.constant 0 : index
    %9 = vector.load %arg2[%c0_9, %c1, %c0_10, %c0_11] : memref<1x8x2x512xf32, #tpu.memory_space<vmem>>, vector<1x1x2x512xf32>
    %10 = vector.shape_cast %9 : vector<1x1x2x512xf32> to vector<2x512xf32>
    %c0_12 = arith.constant 0 : index
    %c1_13 = arith.constant 1 : index
    %c0_14 = arith.constant 0 : index
    %11 = vector.load %arg3[%c0_12, %c1_13, %c0_14] : memref<1x8x512xf32, #tpu.memory_space<vmem>>, vector<1x1x512xf32>
    %12 = vector.shape_cast %11 : vector<1x1x512xf32> to vector<1x512xf32>
    %13 = vector.broadcast %12 : vector<1x512xf32> to vector<2x512xf32>
    %14 = arith.mulf %10, %13 : vector<2x512xf32>
    %15 = arith.addf %8, %14 : vector<2x512xf32>
    %c0_15 = arith.constant 0 : index
    %c2 = arith.constant 2 : index
    %c0_16 = arith.constant 0 : index
    %c0_17 = arith.constant 0 : index
    %16 = vector.load %arg2[%c0_15, %c2, %c0_16, %c0_17] : memref<1x8x2x512xf32, #tpu.memory_space<vmem>>, vector<1x1x2x512xf32>
    %17 = vector.shape_cast %16 : vector<1x1x2x512xf32> to vector<2x512xf32>
    %c0_18 = arith.constant 0 : index
    %c2_19 = arith.constant 2 : index
    %c0_20 = arith.constant 0 : index
    %18 = vector.load %arg3[%c0_18, %c2_19, %c0_20] : memref<1x8x512xf32, #tpu.memory_space<vmem>>, vector<1x1x512xf32>
    %19 = vector.shape_cast %18 : vector<1x1x512xf32> to vector<1x512xf32>
    %20 = vector.broadcast %19 : vector<1x512xf32> to vector<2x512xf32>
    %21 = arith.mulf %17, %20 : vector<2x512xf32>
    %22 = arith.addf %15, %21 : vector<2x512xf32>
    %c0_21 = arith.constant 0 : index
    %c3 = arith.constant 3 : index
    %c0_22 = arith.constant 0 : index
    %c0_23 = arith.constant 0 : index
    %23 = vector.load %arg2[%c0_21, %c3, %c0_22, %c0_23] : memref<1x8x2x512xf32, #tpu.memory_space<vmem>>, vector<1x1x2x512xf32>
    %24 = vector.shape_cast %23 : vector<1x1x2x512xf32> to vector<2x512xf32>
    %c0_24 = arith.constant 0 : index
    %c3_25 = arith.constant 3 : index
    %c0_26 = arith.constant 0 : index
    %25 = vector.load %arg3[%c0_24, %c3_25, %c0_26] : memref<1x8x512xf32, #tpu.memory_space<vmem>>, vector<1x1x512xf32>
    %26 = vector.shape_cast %25 : vector<1x1x512xf32> to vector<1x512xf32>
    %27 = vector.broadcast %26 : vector<1x512xf32> to vector<2x512xf32>
    %28 = arith.mulf %24, %27 : vector<2x512xf32>
    %29 = arith.addf %22, %28 : vector<2x512xf32>
    %c0_27 = arith.constant 0 : index
    %c4 = arith.constant 4 : index
    %c0_28 = arith.constant 0 : index
    %c0_29 = arith.constant 0 : index
    %30 = vector.load %arg2[%c0_27, %c4, %c0_28, %c0_29] : memref<1x8x2x512xf32, #tpu.memory_space<vmem>>, vector<1x1x2x512xf32>
    %31 = vector.shape_cast %30 : vector<1x1x2x512xf32> to vector<2x512xf32>
    %c0_30 = arith.constant 0 : index
    %c4_31 = arith.constant 4 : index
    %c0_32 = arith.constant 0 : index
    %32 = vector.load %arg3[%c0_30, %c4_31, %c0_32] : memref<1x8x512xf32, #tpu.memory_space<vmem>>, vector<1x1x512xf32>
    %33 = vector.shape_cast %32 : vector<1x1x512xf32> to vector<1x512xf32>
    %34 = vector.broadcast %33 : vector<1x512xf32> to vector<2x512xf32>
    %35 = arith.mulf %31, %34 : vector<2x512xf32>
    %36 = arith.addf %29, %35 : vector<2x512xf32>
    %c0_33 = arith.constant 0 : index
    %c5 = arith.constant 5 : index
    %c0_34 = arith.constant 0 : index
    %c0_35 = arith.constant 0 : index
    %37 = vector.load %arg2[%c0_33, %c5, %c0_34, %c0_35] : memref<1x8x2x512xf32, #tpu.memory_space<vmem>>, vector<1x1x2x512xf32>
    %38 = vector.shape_cast %37 : vector<1x1x2x512xf32> to vector<2x512xf32>
    %c0_36 = arith.constant 0 : index
    %c5_37 = arith.constant 5 : index
    %c0_38 = arith.constant 0 : index
    %39 = vector.load %arg3[%c0_36, %c5_37, %c0_38] : memref<1x8x512xf32, #tpu.memory_space<vmem>>, vector<1x1x512xf32>
    %40 = vector.shape_cast %39 : vector<1x1x512xf32> to vector<1x512xf32>
    %41 = vector.broadcast %40 : vector<1x512xf32> to vector<2x512xf32>
    %42 = arith.mulf %38, %41 : vector<2x512xf32>
    %43 = arith.addf %36, %42 : vector<2x512xf32>
    %c0_39 = arith.constant 0 : index
    %c6 = arith.constant 6 : index
    %c0_40 = arith.constant 0 : index
    %c0_41 = arith.constant 0 : index
    %44 = vector.load %arg2[%c0_39, %c6, %c0_40, %c0_41] : memref<1x8x2x512xf32, #tpu.memory_space<vmem>>, vector<1x1x2x512xf32>
    %45 = vector.shape_cast %44 : vector<1x1x2x512xf32> to vector<2x512xf32>
    %c0_42 = arith.constant 0 : index
    %c6_43 = arith.constant 6 : index
    %c0_44 = arith.constant 0 : index
    %46 = vector.load %arg3[%c0_42, %c6_43, %c0_44] : memref<1x8x512xf32, #tpu.memory_space<vmem>>, vector<1x1x512xf32>
    %47 = vector.shape_cast %46 : vector<1x1x512xf32> to vector<1x512xf32>
    %48 = vector.broadcast %47 : vector<1x512xf32> to vector<2x512xf32>
    %49 = arith.mulf %45, %48 : vector<2x512xf32>
    %50 = arith.addf %43, %49 : vector<2x512xf32>
    %c0_45 = arith.constant 0 : index
    %c7 = arith.constant 7 : index
    %c0_46 = arith.constant 0 : index
    %c0_47 = arith.constant 0 : index
    %51 = vector.load %arg2[%c0_45, %c7, %c0_46, %c0_47] : memref<1x8x2x512xf32, #tpu.memory_space<vmem>>, vector<1x1x2x512xf32>
    %52 = vector.shape_cast %51 : vector<1x1x2x512xf32> to vector<2x512xf32>
    %c0_48 = arith.constant 0 : index
    %c7_49 = arith.constant 7 : index
    %c0_50 = arith.constant 0 : index
    %53 = vector.load %arg3[%c0_48, %c7_49, %c0_50] : memref<1x8x512xf32, #tpu.memory_space<vmem>>, vector<1x1x512xf32>
    %54 = vector.shape_cast %53 : vector<1x1x512xf32> to vector<1x512xf32>
    %55 = vector.broadcast %54 : vector<1x512xf32> to vector<2x512xf32>
    %56 = arith.mulf %52, %55 : vector<2x512xf32>
    %57 = arith.addf %50, %56 : vector<2x512xf32>
    %c0_51 = arith.constant 0 : index
    %c0_52 = arith.constant 0 : index
    %c0_53 = arith.constant 0 : index
    %58 = vector.load %arg5[%c0_51, %c0_52, %c0_53] : memref<1x2x512xf32, #tpu.memory_space<vmem>>, vector<1x2x512xf32>
    %59 = vector.shape_cast %58 : vector<1x2x512xf32> to vector<2x512xf32>
    %60 = vector.shape_cast %57 : vector<2x512xf32> to vector<1x2x512xf32>
    tpu.vector_store %arg5[%c0_51, %c0_52, %c0_53], %60 {strides = array<i32>} : memref<1x2x512xf32, #tpu.memory_space<vmem>>, vector<1x2x512xf32>,
    return
  }
  func.func @transform_0(%arg0: i32, %arg1: i32) -> (i32, i32, i32, i32) {
    %c0_i32 = arith.constant 0 : i32
    %c0_i32_0 = arith.constant 0 : i32
    %c0_i32_1 = arith.constant 0 : i32
    return %arg0, %c0_i32, %c0_i32_0, %arg1 : i32, i32, i32, i32
  }
  func.func @transform_1(%arg0: i32, %arg1: i32) -> (i32, i32, i32) {
    %c0_i32 = arith.constant 0 : i32
    %c0_i32_0 = arith.constant 0 : i32
    return %arg0, %c0_i32, %arg1 : i32, i32, i32
  }
  func.func @transform_2(%arg0: i32, %arg1: i32) -> (i32, i32, i32) {
    %c0_i32 = arith.constant 0 : i32
    %c0_i32_0 = arith.constant 0 : i32
    return %arg0, %c0_i32, %arg1 : i32, i32, i32
  }
  func.func @transform_3(%arg0: i32, %arg1: i32) -> (i32, i32, i32) {
    %c0_i32 = arith.constant 0 : i32
    %c0_i32_0 = arith.constant 0 : i32
    return %arg0, %c0_i32, %arg1 : i32, i32, i32
  }
}

</mosaic_0001>

<bundles_post_ra>
// kernel: _lambda_.5
= control target key start
LH: loop header
LB: loop body
LE: loop exit
PB: predicated region body
PF: predicated region fallthrough
CT: control target
= control target key end

     0   :  { %vm81_vm0 = vcmask 1045504   ;;  %v142_v2 = vmov 0   ;;  %vm77_vm1 = vcmask 883712   ;;  %s196_s1 = inlined_call_operand.vmem [shape: bf16[108,128], index: 1, kind: input, shape index: {}]   ;;  %s197_s2 = inlined_call_operand.vmem [shape: f32[4,1], index: 2, kind: input, shape index: {}]   ;;  %s198_s0 = inlined_call_operand.vmem [shape: bf16[4,108], index: 0, kind: input, shape index: {}]   ;;  %s199_s3 = inlined_call_operand.vmem [shape: f32[4,128], index: 3, kind: output, shape index: {}]  }
   0x1   :  { %v130_v0 = vld [vmem:[%s196_s1 + $0x30] sm:$0xf]  ;;  %v139_v1 = vld [vmem:[%s196_s1 + $0x30] sm:$0x30]  ;;  %141 = vset.pattern.permute.xlu0 %v142_v2  ;;  %v30_v5 = vld [vmem:[%s197_s2] sm:$0xf] }
   0x2   :  { %v131_v3 = vor.u32 %v139_v1, %v130_v0  ;;  %v138_v6 = vld [vmem:[%s196_s1 + $0x28] sm:$0xff]  ;;  %33 = vperm.xlu0 %141, %v30_v5   ;;  %v137_v7 = vld [vmem:[%s196_s1 + $0x20] sm:$0xff]  ;;  %v136_v8 = vld [vmem:[%s196_s1 + $0x18] sm:$0xff] }
   0x3   :  { %v135_v9 = vld [vmem:[%s196_s1 + $0x10] sm:$0xff]  ;;  %v134_v10 = vld [vmem:[%s196_s1 + $0x8] sm:$0xff]  ;;  %v133_v11 = vld [vmem:[%s196_s1] sm:$0xff] }
   0x4   :  { %v83_v4 = vsel %vm81_vm0, %v131_v3, 0  ;;  %v15_v12 = vld [vmem:[%s198_s0] sm:$0x3] }
   0x5   :  { %86 = vmatpush.bf16.msra.mxu0 %v83_v4 }
   0x9   :  { %87 = vmatpush.bf16.msra.mxu0 %v138_v6 }
   0xd   :  { %88 = vmatpush.bf16.msra.mxu0 %v137_v7 }
  0x11   :  { %89 = vmatpush.bf16.msra.mxu0 %v136_v8 }
  0x15   :  { %90 = vmatpush.bf16.msra.mxu0 %v135_v9 }
  0x19   :  { %91 = vmatpush.bf16.msra.mxu0 %v134_v10 }
  0x1d   :  { %92 = vmatpush.bf16.msra.mxu0 %v133_v11 }
  0x20   :  { %132 = vmatmul.msk.bf16.vlgmr.msra.gmra.mxu0 %vm77_vm1, %v15_v12 }
  0x74   :  { %v34_v13 = vpop.permute.xlu0 %33 }
  0x9d   :  { %v94_v14 = vpop.f32.mrf.mxu0 }
  0x9e   :  { %v95_v15 = vadd.f32 %v94_v14, %v34_v13 }
  0xa0   :  { %v98_v16 = vmax.f32 %v95_v15, 0.0 }
  0xa2   :  { %99 = vst [vmem:[%s199_s3] sm:$0xf] %v98_v16 }
  0xa5   :  { %v96_v17 = vpop.f32.mrf.mxu0 }

// kernel: _lambda_.7
= control target key start
LH: loop header
LB: loop body
LE: loop exit
PB: predicated region body
PF: predicated region fallthrough
CT: control target
= control target key end

     0   :  { %vm29_vm0 = vcmask 261120   ;;  %vm85_vm1 = vcmask 91136   ;;  %s161_s1 = inlined_call_operand.vmem [shape: f32[32,32], index: 1, kind: input, shape index: {}]   ;;  %s162_s3 = inlined_call_operand.vmem [shape: f32[32,12], index: 3, kind: input, shape index: {}]   ;;  %s163_s2 = inlined_call_operand.vmem [shape: f32[1,32], index: 2, kind: input, shape index: {}]   ;;  %s164_s0 = inlined_call_operand.vmem [shape: f32[2,32], index: 0, kind: input, shape index: {}]   ;;  %s165_s4 = inlined_call_operand.vmem [shape: f32[1,12], index: 4, kind: input, shape index: {}]   ;;  %s166_s5 = inlined_call_operand.vmem [shape: f32[2,12], index: 5, kind: output, shape index: {}]  }
   0x1   :  { %v24_v0 = vld [vmem:[%s161_s1 + $0x18] sm:$0xff]  ;;  %v23_v1 = vld [vmem:[%s161_s1 + $0x10] sm:$0xff]  ;;  %v22_v3 = vld [vmem:[%s161_s1 + $0x8] sm:$0xff] }
   0x2   :  { %45 = vmatpush.msra.mxu0 %v24_v0  ;;  %v57_v2 = vld [vmem:[%s162_s3 + $0x18] sm:$0xff]  ;;  %v21_v4 = vld [vmem:[%s161_s1] sm:$0xff]  ;;  %v56_v6 = vld [vmem:[%s162_s3 + $0x10] sm:$0xff] }
   0x3   :  { %77 = vmatpush.msra.mxu1 %v57_v2  ;;  %v20_v5 = vld [vmem:[%s164_s0] sm:$0x3]  ;;  %v55_v7 = vld [vmem:[%s162_s3 + $0x8] sm:$0xff] }
   0x4   :  { %46 = vmatpush.msra.mxu0 %v23_v1  ;;  %v54_v8 = vld [vmem:[%s162_s3] sm:$0xff] }
   0x5   :  { %78 = vmatpush.msra.mxu1 %v56_v6  ;;  %v93_v9 = vld [vmem:[%s163_s2] ss:$0 sm:$0xff] }
   0x6   :  { %47 = vmatpush.msra.mxu0 %v22_v3  ;;  %v94_v13 = vld [vmem:[%s165_s4] ss:$0 sm:$0xff] }
   0x7   :  { %79 = vmatpush.msra.mxu1 %v55_v7 }
   0x8   :  { %48 = vmatpush.msra.mxu0 %v21_v4 }
   0x9   :  { %91 = vmatmul.msk.f32.vlgmr.msra.gmra.mxu0 %vm29_vm0, %v20_v5  ;;  %80 = vmatpush.msra.mxu1 %v54_v8 }
  0x86   :  { %v50_v10 = vpop.f32.mrf.mxu0 }
  0x87   :  { %v51_v11 = vadd.f32 %v93_v9, %v50_v10 }
  0x89   :  { %v53_v12 = vmax.f32 %v51_v11, 0.0 }
  0x8b   :  { %92 = vmatmul.msk.f32.vlgmr.msra.gmra.mxu1 %vm29_vm0, %v53_v12 }
 0x108   :  { %v82_v14 = vpop.f32.mrf.mxu1 }
 0x109   :  { %v83_v15 = vadd.f32 %v94_v13, %v82_v14 }
 0x10b   :  { %86 = vst.msk [vmem:[%s166_s5] sm:$0x3] %vm85_vm1, %v83_v15 }

// kernel: _lambda_.8
= control target key start
LH: loop header
LB: loop body
LE: loop exit
PB: predicated region body
PF: predicated region fallthrough
CT: control target
= control target key end

     0   :  { %9 = vsyncpa [#allocation3], 0  ;;  %s865_s12 = smov 0   ;;  %s867_s13 = smov 0   ;;  %s1189_s0 = inlined_call_operand.vmem [shape: f32[2,12], index: 0, kind: input, shape index: {}]   ;;  %s1190_s1 = inlined_call_operand.vmem [shape: f32[3,512], index: 1, kind: input, shape index: {}]   ;;  %s1191_s2 = inlined_call_operand.vmem [shape: f32[2,8,512], index: 2, kind: output, shape index: {0}]   ;;  %s1192_s3 = inlined_call_operand.vmem [shape: s32[2,8,512], index: 3, kind: output, shape index: {1}]  }
   0x1   :  { %s869_s14 = smov 0  }
   0x2 LB: > { %s739_s15 = sadd.s32 4294967295, %s842_s14   ;;  %s27_s16 = sadd.s32 1, %s838_s13  ;;  %s842_s14 = sphi %s869_s14, %s15_s14   ;;  %s838_s13 = sphi %s867_s13, %s1262_s13   ;;  %s834_s12 = sphi %s865_s12, %s1261_s12  }
   0x3   : > { %p29_p0 = scmp.ge.s32.totalorder %s27_s16, 2  ;;  %p741_p1 = scmp.ge.s32.totalorder %s842_s14, 1 }
   0x4   : > { %p135_p2 = scmp.lt.s32.totalorder %s842_s14, 3  ;;  %p774_p4 = scmp.eq.s32.totalorder %s739_s15, 0 }
   0x5   : > { %s1264_s16 = smov (%p29_p0, %s27_s16), 0  ;;  %s147_s19 = sshll.u32 %s1189_s0, 4  ;;  %s148_s19 = int_to_ptr.vmem [resolvable:$true] %s147_s19 }
   0x6   : > { %p136_p3 = pnand %p741_p1, %p135_p2  ;;  %s844_s20 = smov [#allocation2]  }
   0x8   : > { %p770_p5 = pneg %p136_p3  ;;  %169 = sbr.rel (%p136_p3) target bundleno = 121 (0x79), region = 28 }
   0xa   : > { %p771_p6 = pnand %p774_p4, %p770_p5 }
   0xc   : > { %773 = dma.vmem_to_smem (!%p771_p6), %s148_s19, 32, %s844_s20, [#allocation3]  }
   0xd   : > { %829 = dma.done.wait (%p774_p4), [#allocation3], 32  }
   0xe   : > { %831 = vsyncadd (%p774_p4), [#allocation3], 4294967264 }
   0xf   : > { %176 = sfence }
  0x10   : > { %s890_s21 = sshll.u32 %s834_s12, 7  ;;  %v234_v0 = vld [vmem:[%s1190_s1] ss:$4 sm:$0xf]  ;;  %p215_p7 = scmp.lt.s32.totalorder %s834_s12, 1 }
  0x11   : > { %s240_s22 = sld [smem:[#allocation2 + %s890_s21]]  ;;  %s241_s23 = sadd.s32 1, %s890_s21  ;;  %v750_v2 = vld [vmem:[%s1190_s1 + $0x1] ss:$4 sm:$0xf] }
  0x12   : > { %s242_s24 = sld [smem:[#allocation2 + %s241_s23]]  ;;  %s243_s25 = sadd.s32 2, %s890_s21  ;;  %v751_v6 = vld [vmem:[%s1190_s1 + $0x2] ss:$4 sm:$0xf] }
  0x13   : > { %s244_s26 = sld [smem:[#allocation2 + %s243_s25]]  ;;  %s245_s27 = sadd.s32 3, %s890_s21 }
  0x14   : > { %s896_s28 = sld [smem:[#allocation2 + %s245_s27]]  ;;  %s247_s29 = sadd.s32 4, %s890_s21 }
  0x15   : > { %s248_s30 = sld [smem:[#allocation2 + %s247_s29]]  ;;  %s249_s4 = sadd.s32 5, %s890_s21 }
  0x16   : > { %s250_s7 = sld [smem:[#allocation2 + %s249_s4]]  ;;  %s251_s8 = sadd.s32 6, %s890_s21 }
  0x17   : > { %v263_v1 = vstv %s240_s22  ;;  %s252_s11 = sld [smem:[#allocation2 + %s251_s8]]  ;;  %s253_s15 = sadd.s32 7, %s890_s21 }
  0x18   : > { %v264_v3 = vmul.f32 %v263_v1, %v234_v0  ;;  %v265_v4 = vstv %s242_s24  ;;  %s908_s17 = sld [smem:[#allocation2 + %s253_s15]]  ;;  %s255_s18 = sadd.s32 8, %s890_s21 }
  0x19   : > { %v266_v5 = vmul.f32 %v750_v2, %v265_v4  ;;  %s256_s23 = sld [smem:[#allocation2 + %s255_s18]]  ;;  %s257_s22 = sadd.s32 9, %s890_s21  ;;  %v268_v7 = vstv %s244_s26 }
  0x1a   : > { %s258_s25 = sld [smem:[#allocation2 + %s257_s22]]  ;;  %s259_s27 = sadd.s32 10, %s890_s21  ;;  %v269_v9 = vmul.f32 %v751_v6, %v268_v7  ;;  %v271_v10 = vstv %s896_s28 }
  0x1b   : > { %v267_v8 = vadd.f32 %v266_v5, %v264_v3  ;;  %s260_s29 = sld [smem:[#allocation2 + %s259_s27]]  ;;  %s261_s4 = sadd.s32 11, %s890_s21  ;;  %v273_v11 = vstv %s248_s30 }
  0x1c   : > { %s262_s24 = sld [smem:[#allocation2 + %s261_s4]]  ;;  %v274_v13 = vmul.f32 %v273_v11, %v234_v0  ;;  %v275_v14 = vstv %s250_s7  ;;  %s1266_s12 = smov (!%p215_p7, %s834_s12), 1 }
  0x1d   : > { %v270_v12 = vadd.f32 %v269_v9, %v267_v8  ;;  %v276_v15 = vmul.f32 %v750_v2, %v275_v14  ;;  %v278_v16 = vstv %s252_s11  ;;  %s758_s21 = sshll.u32 %s1266_s12, 5 }
  0x1e   : > { %v279_v18 = vmul.f32 %v751_v6, %v278_v16  ;;  %v281_v21 = vstv %s908_s17  ;;  %s222_s30 = scalar_lea.vmem %s1191_s2, %s758_s21  ;;  %s1150_s7 = scalar_lea.vmem %s1192_s3, %s758_s21 }
  0x1f   : > { %v272_v17 = vadd.f32 %v271_v10, %v270_v12  ;;  %v277_v19 = vadd.f32 %v276_v15, %v274_v13  ;;  %v283_v20 = vstv %s256_s23 }
  0x20   : > { %v284_v22 = vmul.f32 %v283_v20, %v234_v0  ;;  %v285_v23 = vstv %s258_s25 }
  0x21   : > { %v293_v24 = vadd.f32 1.0, %v272_v17  ;;  %v280_v25 = vadd.f32 %v279_v18, %v277_v19  ;;  %v286_v26 = vmul.f32 %v750_v2, %v285_v23  ;;  %v288_v27 = vstv %s260_s29 }
  0x22   : > { %v289_v28 = vmul.f32 %v751_v6, %v288_v27  ;;  %v291_v32 = vstv %s262_s24 }
  0x23   : > { %v294_v29 = vmul.f32 8.0, %v293_v24  ;;  %v282_v30 = vadd.f32 %v281_v21, %v280_v25  ;;  %v287_v31 = vadd.f32 %v286_v26, %v284_v22 }
  0x25   : > { %v753_v33 = vadd.f32 -1.0, %v294_v29  ;;  %v290_v34 = vadd.f32 %v289_v28, %v287_v31  ;;  %v297_v35 = vadd.f32 1.0, %v282_v30 }
  0x27   : > { %v296_v36 = vmul.f32 0.5, %v753_v33  ;;  %v292_v37 = vadd.f32 %v291_v32, %v290_v34  ;;  %v298_v38 = vmul.f32 8.0, %v297_v35 }
  0x29   : > { %v305_v39 = vfloor.f32 %v296_v36  ;;  %v754_v40 = vadd.f32 -1.0, %v298_v38  ;;  %v301_v41 = vadd.f32 1.0, %v292_v37 }
  0x2b   : > { %v308_v42 = vsub.f32 %v296_v36, %v305_v39  ;;  %v761_v43 = vcvt.f32.s32 %v305_v39  ;;  %v300_v44 = vmul.f32 0.5, %v754_v40  ;;  %v302_v45 = vmul.f32 8.0, %v301_v41 }
  0x2d   : > { %vm319_vm0 = vcmp.ge.s32.totalorder %v761_v43, 0  ;;  %vm320_vm1 = vcmp.lt.s32.totalorder %v761_v43, 8  ;;  %v347_v46 = vadd.s32 1, %v761_v43  ;;  %v755_v47 = vadd.f32 -1.0, %v302_v45 }
  0x2e   : > { %v306_v48 = vfloor.f32 %v300_v44  ;;  %v309_v49 = vsub.f32 1.0, %v308_v42  ;;  %vm331_vm2 = vcmp.gt.s32.totalorder %v761_v43, 0  ;;  %vm919_vm6 = vmand %vm319_vm0, %vm320_vm1 }
  0x2f   : > { %vm350_vm3 = vcmp.ge.s32.totalorder %v347_v46, 0  ;;  %vm351_vm4 = vcmp.lt.s32.totalorder %v347_v46, 8  ;;  %v332_v50 = vsel %vm331_vm2, %v761_v43, 0  ;;  %vm358_vm5 = vcmp.gt.s32.totalorder %v347_v46, 0 }
  0x30   : > { %v304_v51 = vmul.f32 0.5, %v755_v47  ;;  %v310_v52 = vsub.f32 %v300_v44, %v306_v48  ;;  %v763_v53 = vcvt.f32.s32 %v306_v48  ;;  %vm333_vm7 = vcmp.lt.s32.totalorder %v332_v50, 7  ;;  %vm925_vm10 = vmand %vm350_vm3, %vm351_vm4 }
  0x31   : > { %v923_v55 = vsel %vm333_vm7, %v332_v50, 7  ;;  %v359_v61 = vsel %vm358_vm5, %v347_v46, 0 }
  0x32   : > { %v307_v56 = vfloor.f32 %v304_v51  ;;  %v311_v57 = vsub.f32 1.0, %v310_v52  ;;  %vm322_vm8 = vcmp.ge.s32.totalorder %v763_v53, 0  ;;  %vm324_vm9 = vcmp.lt.s32.totalorder %v763_v53, 8 }
  0x33   : > { %vm323_vm11 = vmand %vm919_vm6, %vm322_vm8  ;;  %v931_v59 = vadd.s32 1, %v763_v53  ;;  %v364_v60 = vmul.f32 %v310_v52, %v309_v49  ;;  %vm335_vm13 = vcmp.gt.s32.totalorder %v763_v53, 0  ;;  %v380_v3 = vmul.f32 %v310_v52, %v308_v42 }
  0x34   : > { %v312_v62 = vsub.f32 %v304_v51, %v307_v56  ;;  %v934_v63 = vcvt.f32.s32 %v307_v56  ;;  %v317_v0 = vmul.f32 %v311_v57, %v309_v49  ;;  %vm937_vm14 = vmand %vm323_vm11, %vm324_vm9  ;;  %v348_v2 = vmul.f32 %v311_v57, %v308_v42 }
  0x35   : > { %vm353_vm15 = vmand %vm925_vm10, %vm322_vm8  ;;  %vm366_vm0 = vcmp.ge.s32.totalorder %v931_v59, 0  ;;  %vm1194_vm1 = vcmp.lt.s32.totalorder %v931_v59, 8  ;;  %v336_v4 = vsel %vm335_vm13, %v763_v53, 0  ;;  %vm360_vm5 = vcmp.lt.s32.totalorder %v359_v61, 7 }
  0x36   : > { %v313_v5 = vsub.f32 1.0, %v312_v62  ;;  %vm1193_vm2 = vcmp.ge.s32.totalorder %v934_v63, 0  ;;  %vm328_vm3 = vcmp.lt.s32.totalorder %v934_v63, 8  ;;  %vm948_vm4 = vmand %vm353_vm15, %vm324_vm9  ;;  %v957_v7 = vadd.s32 1, %v934_v63 }
  0x37   : > { %vm327_vm7 = vmand %vm937_vm14, %vm1193_vm2  ;;  %v959_v8 = vmul.f32 %v317_v0, %v312_v62  ;;  %v961_v9 = vmul.f32 %v348_v2, %v312_v62  ;;  %v963_v10 = vmul.f32 %v364_v60, %v312_v62  ;;  %v967_v14 = vmul.f32 %v380_v3, %v312_v62 }
  0x38   : > { %v318_v11 = vmul.f32 %v317_v0, %v313_v5  ;;  %vm329_vm9 = vmand %vm327_vm7, %vm328_vm3  ;;  %v349_v12 = vmul.f32 %v348_v2, %v313_v5  ;;  %v365_v13 = vmul.f32 %v364_v60, %v313_v5  ;;  %v381_v15 = vmul.f32 %v380_v3, %v313_v5 }
  0x39   : > { %vm355_vm11 = vmand %vm948_vm4, %vm1193_vm2  ;;  %vm337_vm15 = vcmp.lt.s32.totalorder %v336_v4, 7  ;;  %vm339_vm12 = vcmp.gt.s32.totalorder %v934_v63, 0  ;;  %v981_v19 = vsel %vm360_vm5, %v359_v61, 7 }
  0x3a   : > { %v330_v16 = vsel %vm329_vm9, %v318_v11, 0.0  ;;  %vm356_vm8 = vmand %vm355_vm11, %vm328_vm3  ;;  %v977_v17 = vsel %vm337_vm15, %v336_v4, 7  ;;  %v340_v18 = vsel %vm339_vm12, %v934_v63, 0  ;;  %vm1205_vm15 = vcmask 1040384  }
  0x3b   : > { %v357_v20 = vsel %vm356_vm8, %v349_v12, 0.0  ;;  %vm367_vm7 = vmand %vm919_vm6, %vm366_vm0  ;;  %v419_v21 = vperm.slane %v330_v16, 0  ;;  %v420_v22 = vperm.slane %v330_v16, 1  ;;  %v421_v23 = vperm.slane %v330_v16, 2 }
  0x3c   : > { %vm989_vm9 = vmand %vm367_vm7, %vm1194_vm1  ;;  %v428_v25 = vperm.slane %v357_v20, 0  ;;  %v429_v26 = vperm.slane %v357_v20, 1  ;;  %v430_v27 = vperm.slane %v357_v20, 2  ;;  %v422_v28 = vperm.slane %v330_v16, 3 }
  0x3d   : > { %vm370_vm12 = vmand %vm989_vm9, %vm1193_vm2  ;;  %v431_v29 = vperm.slane %v357_v20, 3  ;;  %vm341_vm5 = vcmp.lt.s32.totalorder %v340_v18, 7  ;;  %v344_v30 = vmul.u32 8, %v977_v17  ;;  %vm373_vm8 = vcmp.gt.s32.totalorder %v931_v59, 0 }
  0x3e   : > { %vm371_vm11 = vmand %vm370_vm12, %vm328_vm3  ;;  %v491_v31 = vsel %vm1205_vm15, %v419_v21, %v428_v25  ;;  %v1004_v34 = vsel %vm341_vm5, %v340_v18, 7  ;;  %v374_v38 = vsel %vm373_vm8, %v931_v59, 0  ;;  %vm1209_vm12 = vcmp.lt.s32.totalorder %v931_v59, 8 }
  0x3f   : > { %vm1206_vm7 = vmmov %vm1205_vm15  ;;  %v372_v35 = vsel %vm371_vm11, %v365_v13, 0.0  ;;  %v343_v37 = vmul.u32 64, %v1004_v34  ;;  %vm1213_vm11 = vcmask 1041408   ;;  %vm520_vm5 = vcmask 1046528  }
  0x40   : > { %v492_v32 = vsel %vm1206_vm7, %v420_v22, %v429_v26  ;;  %vm1207_vm13 = vmmov %vm1206_vm7  ;;  %v437_v40 = vperm.slane %v372_v35, 0  ;;  %v438_v41 = vperm.slane %v372_v35, 1  ;;  %v439_v42 = vperm.slane %v372_v35, 2 }
  0x41   : > { %v493_v33 = vsel %vm1207_vm13, %v421_v23, %v430_v27  ;;  %vm382_vm6 = vmand %vm925_vm10, %vm366_vm0  ;;  %v440_v43 = vperm.slane %v372_v35, 3  ;;  %vm1212_vm10 = vcmp.ge.s32.totalorder %v934_v63, 0  ;;  %v345_v44 = vadd.s32 %v344_v30, %v343_v37 }
  0x42   : > { %vm1208_vm1 = vmmov %vm1206_vm7  ;;  %v496_v45 = vsel %vm1213_vm11, %v491_v31, %v437_v40  ;;  %vm1217_vm13 = vcmp.ge.s32.totalorder %v957_v7, 0 }
  0x43   : > { %v494_v36 = vsel %vm1208_vm1, %v422_v28, %v431_v29  ;;  %vm1015_vm15 = vmand %vm382_vm6, %vm1209_vm12  ;;  %vm392_vm1 = vcmp.lt.s32.totalorder %v957_v7, 8  ;;  %vm375_vm6 = vcmp.lt.s32.totalorder %v374_v38, 7  ;;  %v1041_v50 = vadd.s32 %v345_v44, %v923_v55 }
  0x44   : > { %vm384_vm0 = vmand %vm1015_vm15, %vm1212_vm10  ;;  %v1044_v51 = vadd.s32 %v981_v19, %v345_v44  ;;  %v1046_v52 = vsel %vm375_vm6, %v374_v38, 7  ;;  %vm1220_vm6 = vcmask 1042432  }
  0x45   : > { %vm385_vm8 = vmand %vm384_vm0, %vm328_vm3  ;;  %v377_v59 = vmul.u32 8, %v1046_v52  ;;  %v529_v61 = vperm.slane %v1041_v50, 0 }
  0x46   : > { %vm1214_vm7 = vmmov %vm1213_vm11  ;;  %v386_v49 = vsel %vm385_vm8, %v381_v15, 0.0 }
  0x47   : > { %v497_v46 = vsel %vm1214_vm7, %v492_v32, %v438_v41  ;;  %vm1215_vm12 = vmmov %vm1214_vm7  ;;  %v446_v53 = vperm.slane %v386_v49, 0  ;;  %v447_v54 = vperm.slane %v386_v49, 1  ;;  %v448_v56 = vperm.slane %v386_v49, 2 }
  0x48   : > { %v498_v47 = vsel %vm1215_vm12, %v493_v33, %v439_v42  ;;  %vm1216_vm10 = vmmov %vm1214_vm7  ;;  %v449_v57 = vperm.slane %v386_v49, 3  ;;  %v378_v38 = vadd.s32 %v377_v59, %v343_v37  ;;  %v533_v41 = vperm.slane %v1044_v51, 0 }
  0x49   : > { %v499_v48 = vsel %vm1216_vm10, %v494_v36, %v440_v43  ;;  %vm391_vm2 = vmand %vm937_vm14, %vm1217_vm13  ;;  %v501_v63 = vsel %vm1220_vm6, %v496_v45, %v446_v53  ;;  %vm1224_vm10 = vcmask 1043456   ;;  %v534_v53 = vperm.slane %v1044_v51, 1 }
  0x4a   : > { %vm393_vm3 = vmand %vm391_vm2, %vm392_vm1  ;;  %v1113_v43 = vadd.s32 %v378_v38, %v923_v55  ;;  %v1116_v44 = vadd.s32 %v378_v38, %v981_v19 }
  0x4b   : > { %v394_v58 = vsel %vm393_vm3, %v959_v8, 0.0  ;;  %vm1218_vm14 = vmmov %vm1217_vm13  ;;  %vm1219_vm13 = vcmp.gt.s32.totalorder %v957_v7, 0 }
  0x4c   : > { %vm403_vm0 = vmand %vm948_vm4, %vm1218_vm14  ;;  %v396_v60 = vsel %vm1219_vm13, %v957_v7, 0  ;;  %v455_v62 = vperm.slane %v394_v58, 0  ;;  %v456_v0 = vperm.slane %v394_v58, 1  ;;  %v457_v3 = vperm.slane %v394_v58, 2 }
  0x4d   : > { %vm404_vm2 = vmand %vm403_vm0, %vm392_vm1  ;;  %v458_v5 = vperm.slane %v394_v58, 3  ;;  %v541_v49 = vperm.slane %v1116_v44, 0  ;;  %v542_v58 = vperm.slane %v1116_v44, 1 }
  0x4e   : > { %vm1221_vm8 = vmmov %vm1220_vm6  ;;  %v405_v2 = vsel %vm404_vm2, %v961_v9, 0.0  ;;  %v506_v8 = vsel %vm1224_vm10, %v501_v63, %v455_v62  ;;  %vm1228_vm2 = vcmask 1044480   ;;  %v535_v63 = vperm.slane %v1044_v51, 2 }
  0x4f   : > { %v502_v1 = vsel %vm1221_vm8, %v497_v46, %v447_v54  ;;  %vm1222_vm4 = vmmov %vm1218_vm14  ;;  %v464_v6 = vperm.slane %v405_v2, 0  ;;  %v465_v11 = vperm.slane %v405_v2, 1  ;;  %v466_v13 = vperm.slane %v405_v2, 2 }
  0x50   : > { %vm408_vm11 = vmand %vm989_vm9, %vm1222_vm4  ;;  %v467_v16 = vperm.slane %v405_v2, 3  ;;  %v538_v54 = vperm.slane %v1113_v43, 1 }
  0x51   : > { %vm1223_vm7 = vmmov %vm1220_vm6  ;;  %v511_v20 = vsel %vm1228_vm2, %v506_v8, %v464_v6 }
  0x52   : > { %v503_v4 = vsel %vm1223_vm7, %v498_v47, %v448_v56  ;;  %vm409_vm12 = vmand %vm408_vm11, %vm392_vm1  ;;  %v530_v47 = vperm.slane %v1041_v50, 1 }
  0x53   : > { %vm1225_vm3 = vmmov %vm1224_vm10  ;;  %v410_v9 = vsel %vm409_vm12, %v963_v10, 0.0  ;;  %vm397_vm10 = vcmp.lt.s32.totalorder %v396_v60, 7 }
  0x54   : > { %v507_v12 = vsel %vm1225_vm3, %v502_v1, %v456_v0  ;;  %vm1226_vm14 = vmmov %vm1222_vm4  ;;  %v473_v18 = vperm.slane %v410_v9, 0  ;;  %v474_v21 = vperm.slane %v410_v9, 1  ;;  %v475_v23 = vperm.slane %v410_v9, 2 }
  0x55   : > { %vm414_vm9 = vmand %vm1015_vm15, %vm1226_vm14  ;;  %v476_v25 = vperm.slane %v410_v9, 3  ;;  %vm1231_vm15 = vcmask 1045504   ;;  %v398_v34 = vsel %vm397_vm10, %v396_v60, 7  ;;  %vm1238_vm14 = vcmask 1040384  }
  0x56   : > { %vm1227_vm0 = vmmov %vm1225_vm3  ;;  %v516_v7 = vsel %vm1231_vm15, %v511_v20, %v473_v18  ;;  %v399_v45 = vmul.u32 64, %v398_v34  ;;  %v561_v46 = vsel %vm1238_vm14, %v529_v61, %v533_v41  ;;  %v531_v60 = vperm.slane %v1041_v50, 2 }
  0x57   : > { %v508_v15 = vsel %vm1227_vm0, %v503_v4, %v457_v3  ;;  %vm415_vm13 = vmand %vm414_vm9, %vm392_vm1  ;;  %vm1239_vm9 = vcmask 1041408   ;;  %v539_v0 = vperm.slane %v1113_v43, 2  ;;  %v543_v3 = vperm.slane %v1116_v44, 2 }
  0x58   : > { %vm1229_vm6 = vmmov %vm1228_vm2  ;;  %v416_v10 = vsel %vm415_vm13, %v967_v14, 0.0  ;;  %v400_v56 = vadd.s32 %v399_v45, %v344_v30 }
  0x59   : > { %v512_v22 = vsel %vm1229_vm6, %v507_v12, %v465_v11  ;;  %vm1230_vm8 = vmmov %vm1228_vm2  ;;  %v482_v26 = vperm.slane %v416_v10, 0  ;;  %v483_v27 = vperm.slane %v416_v10, 1  ;;  %v484_v29 = vperm.slane %v416_v10, 2 }
  0x5a   : > { %v513_v24 = vsel %vm1230_vm8, %v508_v15, %v466_v13  ;;  %vm1232_vm1 = vmmov %vm1231_vm15  ;;  %v485_v32 = vperm.slane %v416_v10, 3  ;;  %v401_v1 = vadd.s32 %v400_v56, %v923_v55  ;;  %v406_v17 = vadd.s32 %v400_v56, %v981_v19 }
  0x5b   : > { %v517_v28 = vsel %vm1232_vm1, %v512_v22, %v474_v21  ;;  %vm1233_vm4 = vmmov %vm1232_vm1  ;;  %v521_v33 = vsel %vm520_vm5, %v516_v7, %v482_v26  ;;  %v532_v26 = vperm.slane %v1041_v50, 3 }
  0x5c   : > { %v518_v31 = vsel %vm1233_vm4, %v513_v24, %v475_v23  ;;  %vm1234_vm11 = vmmov %vm1223_vm7  ;;  %v522_v35 = vsel %vm520_vm5, %v517_v28, %v483_v27  ;;  %525 = vst [vmem:[%s222_s30] sm:$0xff] %v521_v33  ;;  %v549_v6 = vperm.slane %v406_v17, 0  ;;  %v546_v12 = vperm.slane %v401_v1, 1 }
  0x5d   : > { %v504_v14 = vsel %vm1234_vm11, %v499_v48, %v449_v57  ;;  %vm1235_vm7 = vmmov %vm1227_vm0  ;;  %v523_v39 = vsel %vm520_vm5, %v518_v31, %v484_v29  ;;  %526 = vst [vmem:[%s222_s30 + $0x8] sm:$0xff] %v522_v35  ;;  %v537_v48 = vperm.slane %v1113_v43, 0  ;;  %v411_v57 = vadd.s32 %v399_v45, %v377_v59 }
  0x5e   : > { %v509_v36 = vsel %vm1235_vm7, %v504_v14, %v458_v5  ;;  %vm1236_vm12 = vmmov %vm1228_vm2  ;;  %527 = vst [vmem:[%s222_s30 + $0x10] sm:$0xff] %v523_v39  ;;  %v545_v5 = vperm.slane %v401_v1, 0  ;;  %v550_v9 = vperm.slane %v406_v17, 1  ;;  %v551_v18 = vperm.slane %v406_v17, 2 }
  0x5f   : > { %v514_v40 = vsel %vm1236_vm12, %v509_v36, %v467_v16  ;;  %vm1237_vm3 = vmmov %vm1232_vm1  ;;  %v565_v61 = vsel %vm1239_vm9, %v561_v46, %v537_v48  ;;  %v412_v30 = vadd.s32 %v411_v57, %v923_v55  ;;  %v417_v52 = vadd.s32 %v411_v57, %v981_v19 }
  0x60   : > { %v519_v42 = vsel %vm1237_vm3, %v514_v40, %v476_v25  ;;  %vm1240_vm0 = vmmov %vm1238_vm14  ;;  %v547_v16 = vperm.slane %v401_v1, 2  ;;  %v536_v29 = vperm.slane %v1044_v51, 3  ;;  %v540_v14 = vperm.slane %v1113_v43, 3 }
  0x61   : > { %v524_v37 = vsel %vm520_vm5, %v519_v42, %v485_v32  ;;  %v562_v62 = vsel %vm1240_vm0, %v530_v47, %v534_v53  ;;  %vm1241_vm13 = vmmov %vm1234_vm11  ;;  %v553_v8 = vperm.slane %v412_v30, 0  ;;  %v557_v11 = vperm.slane %v417_v52, 0 }
  0x62   : > { %528 = vst [vmem:[%s222_s30 + $0x18] sm:$0xff] %v524_v37  ;;  %v569_v59 = vsel %vm1241_vm13, %v565_v61, %v541_v49  ;;  %vm1242_vm2 = vmmov %vm1239_vm9  ;;  %v554_v13 = vperm.slane %v412_v30, 1  ;;  %v558_v15 = vperm.slane %v417_v52, 1  ;;  %v555_v22 = vperm.slane %v412_v30, 2 }
  0x63   : > { %v566_v2 = vsel %vm1242_vm2, %v562_v62, %v538_v54  ;;  %vm1243_vm6 = vmmov %vm1240_vm0  ;;  %v559_v10 = vperm.slane %v417_v52, 2  ;;  %v544_v33 = vperm.slane %v1116_v44, 3  ;;  %v548_v35 = vperm.slane %v401_v1, 3 }
  0x64   : > { %v563_v4 = vsel %vm1243_vm6, %v531_v60, %v535_v63  ;;  %vm1244_vm8 = vmmov %vm1235_vm7  ;;  %v552_v38 = vperm.slane %v406_v17, 3  ;;  %v556_v40 = vperm.slane %v412_v30, 3  ;;  %v560_v42 = vperm.slane %v417_v52, 3 }
  0x65   : > { %v573_v55 = vsel %vm1244_vm8, %v569_v59, %v545_v5  ;;  %vm1245_vm15 = vmmov %vm1234_vm11 }
  0x66   : > { %v570_v19 = vsel %vm1245_vm15, %v566_v2, %v542_v58  ;;  %vm1246_vm1 = vmmov %vm1236_vm12 }
  0x67   : > { %v577_v20 = vsel %vm1246_vm1, %v573_v55, %v549_v6  ;;  %vm1247_vm4 = vmmov %vm1235_vm7 }
  0x68   : > { %v574_v21 = vsel %vm1247_vm4, %v570_v19, %v546_v12  ;;  %vm1248_vm11 = vmmov %vm1237_vm3 }
  0x69   : > { %v581_v23 = vsel %vm1248_vm11, %v577_v20, %v553_v8  ;;  %vm1249_vm7 = vmmov %vm1246_vm1 }
  0x6a   : > { %v578_v24 = vsel %vm1249_vm7, %v574_v21, %v550_v9  ;;  %vm1250_vm12 = vmmov %vm1242_vm2  ;;  %v585_v7 = vsel %vm520_vm5, %v581_v23, %v557_v11 }
  0x6b   : > { %v567_v25 = vsel %vm1250_vm12, %v563_v4, %v539_v0  ;;  %vm1251_vm10 = vmmov %vm1237_vm3  ;;  %589 = vst [vmem:[%s1150_s7] sm:$0xff] %v585_v7 }
  0x6c   : > { %v582_v27 = vsel %vm1251_vm10, %v578_v24, %v554_v13  ;;  %vm1252_vm3 = vmmov %vm1241_vm13 }
  0x6d   : > { %v571_v28 = vsel %vm1252_vm3, %v567_v25, %v543_v3  ;;  %v586_v31 = vsel %vm520_vm5, %v582_v27, %v558_v15  ;;  %vm1253_vm14 = vmmov %vm1247_vm4 }
  0x6e   : > { %v575_v32 = vsel %vm1253_vm14, %v571_v28, %v547_v16  ;;  %590 = vst [vmem:[%s1150_s7 + $0x8] sm:$0xff] %v586_v31  ;;  %vm1254_vm9 = vmmov %vm1246_vm1 }
  0x6f   : > { %v579_v50 = vsel %vm1254_vm9, %v575_v32, %v551_v18  ;;  %vm1255_vm0 = vmmov %vm1251_vm10 }
  0x70   : > { %v583_v36 = vsel %vm1255_vm0, %v579_v50, %v555_v22  ;;  %vm1256_vm13 = vmmov %vm1243_vm6 }
  0x71   : > { %v564_v39 = vsel %vm1256_vm13, %v532_v26, %v536_v29  ;;  %v587_v51 = vsel %vm520_vm5, %v583_v36, %v559_v10  ;;  %vm1257_vm6 = vmmov %vm1252_vm3 }
  0x72   : > { %v568_v41 = vsel %vm1242_vm2, %v564_v39, %v540_v14  ;;  %591 = vst [vmem:[%s1150_s7 + $0x10] sm:$0xff] %v587_v51  ;;  %vm1258_vm8 = vmmov %vm1247_vm4 }
  0x73   : > { %v572_v43 = vsel %vm1257_vm6, %v568_v41, %v544_v33  ;;  %vm1259_vm15 = vmmov %vm1246_vm1 }
  0x74   : > { %v576_v44 = vsel %vm1258_vm8, %v572_v43, %v548_v35  ;;  %vm1260_vm1 = vmmov %vm1255_vm0 }
  0x75   : > { %v580_v34 = vsel %vm1259_vm15, %v576_v44, %v552_v38 }
  0x76   : > { %v584_v37 = vsel %vm1260_vm1, %v580_v34, %v556_v40 }
  0x77   : > { %v588_v45 = vsel %vm520_vm5, %v584_v37, %v560_v42 }
  0x78   : > { %592 = vst [vmem:[%s1150_s7 + $0x18] sm:$0xff] %v588_v45 }
  0x79 PF: > { %s15_s14 = sadd.s32 1, %s842_s14   ;;  %s1261_s12 = smov %s838_s13 }
  0x7a   : > { %p12_p8 = scmp.ge.s32.totalorder %s15_s14, 4   ;;  %s1262_s13 = smov %s1264_s16 }
  0x7c   :  { %14 = sbr.rel (!%p12_p8) target bundleno = 2 (0x2), region = 77 }
  0x81   :  { %648 = vsyncpa [#allocation3], 1 }
  0x82   :  { %650 = vsyncpa [#allocation3 + $0x1], 1 }

// kernel: _lambda_.9
= control target key start
LH: loop header
LB: loop body
LE: loop exit
PB: predicated region body
PF: predicated region fallthrough
CT: control target
= control target key end

     0   :  { %s653_s12 = smov 0   ;;  %s655_s13 = smov 0   ;;  %s745_s0 = inlined_call_operand.vmem [shape: f32[2,8,2,512], index: 0, kind: input, shape index: {}]   ;;  %s746_s1 = inlined_call_operand.vmem [shape: f32[2,8,512], index: 1, kind: input, shape index: {}]   ;;  %s747_s2 = inlined_call_operand.vmem [shape: f32[2,2,512], index: 2, kind: input, shape index: {}]   ;;  %s748_s3 = inlined_call_operand.vmem [shape: f32[2,2,512], index: 3, kind: output, shape index: {}]  }
   0x1   :  { %s657_s14 = smov 0  }
   0x2 LB: > { %s25_s15 = sadd.s32 1, %s627_s13  ;;  %p556_p0 = scmp.ge.s32.totalorder %s631_s14, 1  ;;  %s631_s14 = sphi %s657_s14, %s13_s14   ;;  %s627_s13 = sphi %s655_s13, %s750_s13   ;;  %s623_s12 = sphi %s653_s12, %s749_s12  }
   0x3   : > { %p27_p1 = scmp.ge.s32.totalorder %s25_s15, 2  ;;  %p192_p2 = scmp.lt.s32.totalorder %s631_s14, 3 }
   0x5   : > { %s752_s15 = smov (%p27_p1, %s25_s15), 0  ;;  %p193_p3 = pnand %p556_p0, %p192_p2 }
   0x6   : > { %p243_p4 = scmp.lt.s32.totalorder (!%p193_p3), %s623_s12, 1 }
   0x7   : > { %196 = sbr.rel (%p193_p3) target bundleno = 48 (0x30), region = 32 }
   0xc   : > { %s754_s12 = smov (!%p243_p4, %s623_s12), 1  ;;  %vm293_vm0 = vcmask 1041408   ;;  %vm295_vm1 = vcmask 1045508   ;;  %vm297_vm2 = vcmask 1043456  }
   0xd   : > { %s581_s16 = sshll.u32 %s754_s12, 6  ;;  %s582_s17 = sshll.u32 %s754_s12, 5 }
   0xe   : > { %s678_s20 = scalar_lea.vmem %s746_s1, %s582_s17  ;;  %s683_s23 = scalar_lea.vmem %s745_s0, %s581_s16 }
   0xf   : > { %s583_s24 = sshll.u32 %s754_s12, 3  ;;  %v284_v0 = vld [vmem:[%s678_s20] ss:$8 sm:$0xf] }
  0x10   : > { %v286_v1 = vperm.slane %v284_v0, 0  ;;  %v287_v2 = vperm.slane %v284_v0, 1  ;;  %v288_v3 = vperm.slane %v284_v0, 2  ;;  %v289_v4 = vperm.slane %v284_v0, 3  ;;  %s270_s27 = scalar_lea.vmem %s747_s2, %s583_s24  ;;  %v283_v6 = vld [vmem:[%s683_s23] sm:$0xff]  ;;  %v565_v26 = vld [vmem:[%s683_s23 + $0x8] sm:$0xff]  ;;  %s280_s30 = scalar_lea.vmem %s748_s3, %s583_s24 }
  0x11   : > { %v566_v5 = vld [vmem:[%s678_s20 + $0x1] ss:$8 sm:$0xf]  ;;  %v568_v14 = vld [vmem:[%s678_s20 + $0x2] ss:$8 sm:$0xf] }
  0x12   : > { %v290_v7 = vrot.slane %v287_v2, 6  ;;  %v291_v8 = vrot.slane %v288_v3, 4  ;;  %v292_v9 = vrot.slane %v289_v4, 2  ;;  %v307_v10 = vperm.slane %v566_v5, 0  ;;  %v282_v20 = vld [vmem:[%s270_s27] sm:$0xff]  ;;  %v567_v40 = vld [vmem:[%s683_s23 + $0x10] sm:$0xff] }
  0x13   : > { %v308_v11 = vperm.slane %v566_v5, 1  ;;  %v309_v12 = vperm.slane %v566_v5, 2  ;;  %v310_v13 = vperm.slane %v566_v5, 3  ;;  %v325_v17 = vperm.slane %v568_v14, 0  ;;  %v569_v54 = vld [vmem:[%s683_s23 + $0x18] sm:$0xff]  ;;  %v571_v4 = vld [vmem:[%s683_s23 + $0x20] sm:$0xff] }
  0x14   : > { %v294_v15 = vsel %vm293_vm0, %v286_v1, %v290_v7  ;;  %v296_v16 = vsel %vm295_vm1, %v291_v8, %v292_v9  ;;  %v326_v18 = vperm.slane %v568_v14, 1  ;;  %v570_v19 = vld [vmem:[%s678_s20 + $0x3] ss:$8 sm:$0xf]  ;;  %v327_v27 = vperm.slane %v568_v14, 2 }
  0x15   : > { %v298_v21 = vsel %vm297_vm2, %v294_v15, %v296_v16  ;;  %v311_v22 = vrot.slane %v308_v11, 6  ;;  %v312_v23 = vrot.slane %v309_v12, 4  ;;  %v313_v24 = vrot.slane %v310_v13, 2  ;;  %v572_v34 = vld [vmem:[%s678_s20 + $0x4] ss:$8 sm:$0xf] }
  0x16   : > { %v300_v25 = vmul.f32 %v298_v21, %v283_v6  ;;  %v328_v28 = vperm.slane %v568_v14, 3  ;;  %v329_v29 = vrot.slane %v326_v18, 6  ;;  %v343_v32 = vperm.slane %v570_v19, 0  ;;  %v574_v48 = vld [vmem:[%s678_s20 + $0x5] ss:$8 sm:$0xf] }
  0x17   : > { %v314_v30 = vsel %vm293_vm0, %v307_v10, %v311_v22  ;;  %v315_v31 = vsel %vm295_vm1, %v312_v23, %v313_v24  ;;  %v344_v33 = vperm.slane %v570_v19, 1  ;;  %v330_v37 = vrot.slane %v327_v27, 4  ;;  %v576_v62 = vld [vmem:[%s678_s20 + $0x6] ss:$8 sm:$0xf] }
  0x18   : > { %v301_v35 = vadd.f32 %v300_v25, %v282_v20  ;;  %v316_v36 = vsel %vm297_vm2, %v314_v30, %v315_v31  ;;  %v331_v38 = vrot.slane %v328_v28, 2  ;;  %v332_v41 = vsel %vm293_vm0, %v325_v17, %v329_v29  ;;  %v578_v12 = vld [vmem:[%s678_s20 + $0x7] ss:$8 sm:$0xf] }
  0x19   : > { %v318_v39 = vmul.f32 %v565_v26, %v316_v36  ;;  %v345_v42 = vperm.slane %v570_v19, 2  ;;  %v346_v43 = vperm.slane %v570_v19, 3  ;;  %v347_v45 = vrot.slane %v344_v33, 6  ;;  %v573_v18 = vld [vmem:[%s683_s23 + $0x28] sm:$0xff]  ;;  %v575_v31 = vld [vmem:[%s683_s23 + $0x30] sm:$0xff] }
  0x1a   : > { %v333_v44 = vsel %vm295_vm1, %v330_v37, %v331_v38  ;;  %v361_v46 = vperm.slane %v572_v34, 0  ;;  %v362_v47 = vperm.slane %v572_v34, 1  ;;  %v363_v56 = vperm.slane %v572_v34, 2 }
  0x1b   : > { %v319_v49 = vadd.f32 %v318_v39, %v301_v35  ;;  %v334_v50 = vsel %vm297_vm2, %v332_v41, %v333_v44  ;;  %v348_v51 = vrot.slane %v345_v42, 4  ;;  %v349_v52 = vrot.slane %v346_v43, 2  ;;  %v577_v42 = vld [vmem:[%s683_s23 + $0x38] sm:$0xff] }
  0x1c   : > { %v336_v53 = vmul.f32 %v567_v40, %v334_v50  ;;  %v350_v55 = vsel %vm293_vm0, %v343_v32, %v347_v45  ;;  %v364_v57 = vperm.slane %v572_v34, 3  ;;  %v365_v59 = vrot.slane %v362_v47, 6 }
  0x1d   : > { %v351_v58 = vsel %vm295_vm1, %v348_v51, %v349_v52  ;;  %v379_v60 = vperm.slane %v574_v48, 0  ;;  %v380_v61 = vperm.slane %v574_v48, 1  ;;  %v366_v1 = vrot.slane %v363_v56, 4 }
  0x1e   : > { %v337_v63 = vadd.f32 %v336_v53, %v319_v49  ;;  %v352_v0 = vsel %vm297_vm2, %v350_v55, %v351_v58  ;;  %v367_v2 = vrot.slane %v364_v57, 2  ;;  %v368_v5 = vsel %vm293_vm0, %v361_v46, %v365_v59 }
  0x1f   : > { %v354_v3 = vmul.f32 %v569_v54, %v352_v0  ;;  %v381_v6 = vperm.slane %v574_v48, 2  ;;  %v382_v7 = vperm.slane %v574_v48, 3  ;;  %v383_v9 = vrot.slane %v380_v61, 6 }
  0x20   : > { %v369_v8 = vsel %vm295_vm1, %v366_v1, %v367_v2  ;;  %v397_v10 = vperm.slane %v576_v62, 0  ;;  %v398_v11 = vperm.slane %v576_v62, 1  ;;  %v399_v20 = vperm.slane %v576_v62, 2 }
  0x21   : > { %v355_v13 = vadd.f32 %v354_v3, %v337_v63  ;;  %v370_v14 = vsel %vm297_vm2, %v368_v5, %v369_v8  ;;  %v384_v15 = vrot.slane %v381_v6, 4  ;;  %v385_v16 = vrot.slane %v382_v7, 2 }
  0x22   : > { %v372_v17 = vmul.f32 %v571_v4, %v370_v14  ;;  %v386_v19 = vsel %vm293_vm0, %v379_v60, %v383_v9  ;;  %v400_v21 = vperm.slane %v576_v62, 3  ;;  %v401_v23 = vrot.slane %v398_v11, 6 }
  0x23   : > { %v387_v22 = vsel %vm295_vm1, %v384_v15, %v385_v16  ;;  %v415_v24 = vperm.slane %v578_v12, 0  ;;  %v416_v25 = vperm.slane %v578_v12, 1  ;;  %v402_v28 = vrot.slane %v399_v20, 4 }
  0x24   : > { %v373_v26 = vadd.f32 %v372_v17, %v355_v13  ;;  %v388_v27 = vsel %vm297_vm2, %v386_v19, %v387_v22  ;;  %v403_v29 = vrot.slane %v400_v21, 2  ;;  %v404_v32 = vsel %vm293_vm0, %v397_v10, %v401_v23 }
  0x25   : > { %v390_v30 = vmul.f32 %v573_v18, %v388_v27  ;;  %v417_v33 = vperm.slane %v578_v12, 2  ;;  %v418_v34 = vperm.slane %v578_v12, 3  ;;  %v419_v36 = vrot.slane %v416_v25, 6 }
  0x26   : > { %v405_v35 = vsel %vm295_vm1, %v402_v28, %v403_v29 }
  0x27   : > { %v391_v37 = vadd.f32 %v390_v30, %v373_v26  ;;  %v406_v38 = vsel %vm297_vm2, %v404_v32, %v405_v35  ;;  %v420_v39 = vrot.slane %v417_v33, 4  ;;  %v421_v40 = vrot.slane %v418_v34, 2 }
  0x28   : > { %v408_v41 = vmul.f32 %v575_v31, %v406_v38  ;;  %v422_v43 = vsel %vm293_vm0, %v415_v24, %v419_v36 }
  0x29   : > { %v423_v44 = vsel %vm295_vm1, %v420_v39, %v421_v40 }
  0x2a   : > { %v409_v45 = vadd.f32 %v408_v41, %v391_v37  ;;  %v424_v46 = vsel %vm297_vm2, %v422_v43, %v423_v44 }
  0x2b   : > { %v426_v47 = vmul.f32 %v577_v42, %v424_v46 }
  0x2d   : > { %v427_v48 = vadd.f32 %v426_v47, %v409_v45 }
  0x2f   : > { %428 = vst [vmem:[%s280_s30] sm:$0xff] %v427_v48 }
  0x30 PF: > { %s13_s14 = sadd.s32 1, %s631_s14   ;;  %s749_s12 = smov %s627_s13 }
  0x31   : > { %p10_p5 = scmp.ge.s32.totalorder %s13_s14, 4   ;;  %s750_s13 = smov %s752_s15 }
  0x33   :  { %12 = sbr.rel (!%p10_p5) target bundleno = 2 (0x2), region = 82 }

</bundles_post_ra>
